<compile_context>
chip_gen: v7x
topology: tpu7x:2x2x1
jax: 0.10.0
libtpu: 0.0.40
codegen_flags: <defaults>
</compile_context>

<pallas_src>
import functools
import math

import jax
import jax.numpy as jnp
from jax.experimental import pallas as pl
from jax.experimental.pallas import tpu as pltpu

NEG_INF = -1e9
VMEM_LIMIT = 32 * 1024 * 1024


# ----------------------------------------------------------------------------
# Tile-size helper
# ----------------------------------------------------------------------------
def _pick_tile(dim, target, step):
    """Largest tile <= target (multiple of `step`) that evenly divides `dim`,
    or `dim` itself when it is small / has no aligned divisor."""
    if dim <= target:
        return dim
    t = (target // step) * step
    while t >= step:
        if dim % t == 0:
            return t
        t -= step
    return dim


# ----------------------------------------------------------------------------
# Fused linear kernel: [LayerNorm] -> bf16 matmul (f32 acc) -> bias [+ReLU] [+residual]
# ----------------------------------------------------------------------------
def _linear_kernel(x_ref, w_ref, b_ref, *rest, activation, has_ln, has_residual):
    idx = 0
    if has_ln:
        g_ref, beta_ref = rest[0], rest[1]
        idx = 2
    if has_residual:
        res_ref = rest[idx]
        idx += 1
    o_ref = rest[idx]
    acc_ref = rest[idx + 1]

    k = pl.program_id(2)

    @pl.when(k == 0)
    def _():
        acc_ref[...] = jnp.zeros_like(acc_ref)

    x = x_ref[...]
    if has_ln:
        xf = x.astype(jnp.float32)
        mean = jnp.mean(xf, axis=-1, keepdims=True)
        var = jnp.mean((xf - mean) ** 2, axis=-1, keepdims=True)
        x = (xf - mean) * jax.lax.rsqrt(var + 1e-5) * g_ref[...] + beta_ref[...]

    acc_ref[...] += jnp.dot(x.astype(jnp.bfloat16),
                            w_ref[...].astype(jnp.bfloat16),
                            preferred_element_type=jnp.float32)

    @pl.when(k == pl.num_programs(2) - 1)
    def _():
        y = acc_ref[...] + b_ref[...]
        if activation == "relu":
            y = jnp.maximum(y, 0.0)
        if has_residual:
            y = y + res_ref[...].astype(jnp.float32)
        o_ref[...] = y.astype(o_ref.dtype)


def linear(x, w, b, activation=None, ln=None, residual=None, out_dtype=None,
           *, tm=256, tn=256, tk=512):
    """x: (M, K), w: (K, N) [bf16], b: (1, N) -> (M, N).

    ln        : optional {'g','b'} LayerNorm params fused into the prologue (needs tk == K).
    residual  : optional (M, N) array added in the finalize epilogue.
    """
    M, K = x.shape
    N = w.shape[1]
    out_dtype = out_dtype or x.dtype
    n_out = N

    # Pad an unfriendly large N (e.g. odd vocab sizes) to a lane multiple so it can
    # be tiled instead of emitting one huge full-N block.
    if N > tn and N % 128 != 0:
        n_pad = 128 - N % 128
        w = jnp.pad(w, ((0, 0), (0, n_pad)))
        b = jnp.pad(b, ((0, 0), (0, n_pad)))
        if residual is not None:
            residual = jnp.pad(residual, ((0, 0), (0, n_pad)))
        N = N + n_pad

    tm = _pick_tile(M, tm, 8)
    tn = _pick_tile(N, tn, 128)
    tk = _pick_tile(K, tk, 128)

    if ln is not None and tk != K:
        # Cannot fuse LayerNorm when K is tiled; fall back to a standalone LN pass.
        x = layernorm(x, ln["g"], ln["b"])
        ln = None

    grid = (M // tm, N // tn, K // tk)

    in_specs = [
        pl.BlockSpec((tm, tk), lambda i, j, k: (i, k)),
        pl.BlockSpec((tk, tn), lambda i, j, k: (k, j)),
        pl.BlockSpec((1, tn), lambda i, j, k: (0, j)),
    ]
    inputs = [x, w, b]
    if ln is not None:
        in_specs += [pl.BlockSpec((1, tk), lambda i, j, k: (0, k)),
                     pl.BlockSpec((1, tk), lambda i, j, k: (0, k))]
        inputs += [ln["g"], ln["b"]]
    if residual is not None:
        in_specs.append(pl.BlockSpec((tm, tn), lambda i, j, k: (i, j)))
        inputs.append(residual)

    out = pl.pallas_call(
        functools.partial(_linear_kernel, activation=activation,
                          has_ln=ln is not None, has_residual=residual is not None),
        out_shape=jax.ShapeDtypeStruct((M, N), out_dtype),
        grid=grid,
        in_specs=in_specs,
        out_specs=pl.BlockSpec((tm, tn), lambda i, j, k: (i, j)),
        scratch_shapes=[pltpu.VMEM((tm, tn), jnp.float32)],
        compiler_params=pltpu.CompilerParams(
            dimension_semantics=("parallel", "parallel", "arbitrary"),
            vmem_limit_bytes=VMEM_LIMIT),
    )(*inputs)

    if n_out != N:
        out = out[:, :n_out]
    return out


# ----------------------------------------------------------------------------
# Standalone LayerNorm kernel (used where LN cannot be fused into a linear)
# ----------------------------------------------------------------------------
def _layernorm_kernel(x_ref, g_ref, b_ref, o_ref):
    x = x_ref[...].astype(jnp.float32)
    mean = jnp.mean(x, axis=-1, keepdims=True)
    var = jnp.mean((x - mean) ** 2, axis=-1, keepdims=True)
    y = (x - mean) * jax.lax.rsqrt(var + 1e-5)
    o_ref[...] = (y * g_ref[...] + b_ref[...]).astype(o_ref.dtype)


def layernorm(x, g, b, *, tm=256):
    """x: (M, D), g/b: (1, D)."""
    M, D = x.shape
    tm = _pick_tile(M, tm, 8)
    return pl.pallas_call(
        _layernorm_kernel,
        out_shape=jax.ShapeDtypeStruct((M, D), x.dtype),
        grid=(M // tm,),
        in_specs=[
            pl.BlockSpec((tm, D), lambda i: (i, 0)),
            pl.BlockSpec((1, D), lambda i: (0, 0)),
            pl.BlockSpec((1, D), lambda i: (0, 0)),
        ],
        out_specs=pl.BlockSpec((tm, D), lambda i: (i, 0)),
        compiler_params=pltpu.CompilerParams(
            dimension_semantics=("parallel",), vmem_limit_bytes=VMEM_LIMIT),
    )(x, g, b)


# ----------------------------------------------------------------------------
# Flash-tiled attention: grid (B, H, Sq_tiles, Sk_tiles), online softmax in VMEM
# ----------------------------------------------------------------------------
def _flash_attn_kernel(q_ref, k_ref, v_ref, kmask_ref, o_ref,
                       m_ref, l_ref, acc_ref, *, scale, causal, tq, tk):
    ki = pl.program_id(3)

    @pl.when(ki == 0)
    def _():
        m_ref[...] = jnp.full_like(m_ref, -jnp.inf)
        l_ref[...] = jnp.zeros_like(l_ref)
        acc_ref[...] = jnp.zeros_like(acc_ref)

    q = q_ref[...].astype(jnp.bfloat16)          # (tq, Dh)
    k = k_ref[...].astype(jnp.bfloat16)          # (tk, Dh)
    # QK^T: contract the trailing Dh dims directly (no in-kernel transpose).
    s = jax.lax.dot_general(q, k, (((1,), (1,)), ((), ())),
                            preferred_element_type=jnp.float32)   # (tq, tk)
    s = s * scale
    # key padding mask, built from the (1, tk) keep vector (0/1)
    s = s + (1.0 - kmask_ref[...]) * NEG_INF
    if causal:
        q_pos = pl.program_id(2) * tq + jax.lax.broadcasted_iota(jnp.int32, (tq, tk), 0)
        k_pos = ki * tk + jax.lax.broadcasted_iota(jnp.int32, (tq, tk), 1)
        s = jnp.where(q_pos >= k_pos, s, NEG_INF)

    m_prev = m_ref[...]
    m_new = jnp.maximum(m_prev, jnp.max(s, axis=-1, keepdims=True))
    alpha = jnp.exp(m_prev - m_new)
    p = jnp.exp(s - m_new)
    l_ref[...] = alpha * l_ref[...] + jnp.sum(p, axis=-1, keepdims=True)
    acc_ref[...] = alpha * acc_ref[...] + jnp.dot(
        p.astype(jnp.bfloat16), v_ref[...].astype(jnp.bfloat16),
        preferred_element_type=jnp.float32)
    m_ref[...] = m_new

    @pl.when(ki == pl.num_programs(3) - 1)
    def _():
        o_ref[...] = (acc_ref[...] / l_ref[...]).astype(o_ref.dtype)


def attention(q, k, v, key_keep, *, causal, tq=128, tk=256):
    """q: (B,H,Sq,Dh), k/v: (B,H,Sk,Dh), key_keep: (B,1,Sk) float (1=keep, 0=pad)."""
    B, H, Sq, Dh = q.shape
    Sk = k.shape[2]
    scale = 1.0 / math.sqrt(Dh)
    tq = _pick_tile(Sq, tq, 8)
    tk = _pick_tile(Sk, tk, 128)
    grid = (B, H, Sq // tq, Sk // tk)
    return pl.pallas_call(
        functools.partial(_flash_attn_kernel, scale=scale, causal=causal, tq=tq, tk=tk),
        out_shape=jax.ShapeDtypeStruct((B, H, Sq, Dh), q.dtype),
        grid=grid,
        in_specs=[
            pl.BlockSpec((None, None, tq, Dh), lambda b, h, qi, ki: (b, h, qi, 0)),
            pl.BlockSpec((None, None, tk, Dh), lambda b, h, qi, ki: (b, h, ki, 0)),
            pl.BlockSpec((None, None, tk, Dh), lambda b, h, qi, ki: (b, h, ki, 0)),
            pl.BlockSpec((None, 1, tk), lambda b, h, qi, ki: (b, 0, ki)),
        ],
        out_specs=pl.BlockSpec((None, None, tq, Dh), lambda b, h, qi, ki: (b, h, qi, 0)),
        scratch_shapes=[pltpu.VMEM((tq, 1), jnp.float32),
                        pltpu.VMEM((tq, 1), jnp.float32),
                        pltpu.VMEM((tq, Dh), jnp.float32)],
        compiler_params=pltpu.CompilerParams(
            dimension_semantics=("parallel", "parallel", "parallel", "arbitrary"),
            vmem_limit_bytes=VMEM_LIMIT),
    )(q, k, v, key_keep)


# ----------------------------------------------------------------------------
# Model glue (plain JAX): embeddings, PE, head split/merge, masks
# ----------------------------------------------------------------------------
def sinusoidal_pe(seq_len, dim):
    pos = jnp.arange(seq_len, dtype=jnp.float32)[:, None]
    i = jnp.arange(0, dim, 2, dtype=jnp.float32)
    div = jnp.exp(-math.log(10000.0) * i / dim)
    pe = jnp.zeros((seq_len, dim), jnp.float32)
    pe = pe.at[:, 0::2].set(jnp.sin(pos * div))
    pe = pe.at[:, 1::2].set(jnp.cos(pos * div))
    return pe


def embed(ids, table, embed_dim):
    # Embedding(x) * sqrt(embed_dim) + sinusoidal PE; dropout disabled (eval).
    x = jnp.take(table, ids, axis=0) * math.sqrt(embed_dim)
    pe = sinusoidal_pe(ids.shape[1], embed_dim)
    return x + pe[None, :, :]


def mha_self(x, key_keep, p, ln_p, num_heads, causal):
    """Pre-LN self-attention block with fused QKV projection; returns x + attn(LN(x))."""
    B, S, D = x.shape
    Dh = D // num_heads
    x_flat = x.reshape(B * S, D)
    # LN fused into the QKV projection; bf16 output halves attention DMA traffic.
    qkv = linear(x_flat, p["qkv"]["w"], p["qkv"]["b"], ln=ln_p, out_dtype=jnp.bfloat16)
    qkv = qkv.reshape(B, S, 3, num_heads, Dh)
    q = qkv[:, :, 0].transpose(0, 2, 1, 3)   # (B,H,S,Dh)
    k = qkv[:, :, 1].transpose(0, 2, 1, 3)
    v = qkv[:, :, 2].transpose(0, 2, 1, 3)
    o = attention(q, k, v, key_keep, causal=causal)
    o = o.transpose(0, 2, 1, 3).reshape(B * S, D)
    # residual add fused into the o-projection epilogue
    out = linear(o, p["o"]["w"], p["o"]["b"], residual=x_flat, out_dtype=x.dtype)
    return out.reshape(B, S, D)


def mha_cross(x_q, enc_out, key_keep, p, ln_p, num_heads):
    """Pre-LN cross-attention block with fused KV projection; returns x + attn(LN(x), enc)."""
    B, Sq, D = x_q.shape
    Sk = enc_out.shape[1]
    Dh = D // num_heads
    xq_flat = x_q.reshape(B * Sq, D)
    q = linear(xq_flat, p["q"]["w"], p["q"]["b"], ln=ln_p, out_dtype=jnp.bfloat16)
    q = q.reshape(B, Sq, num_heads, Dh).transpose(0, 2, 1, 3)
    kv = linear(enc_out.reshape(B * Sk, D), p["kv"]["w"], p["kv"]["b"],
                out_dtype=jnp.bfloat16)
    kv = kv.reshape(B, Sk, 2, num_heads, Dh)
    k = kv[:, :, 0].transpose(0, 2, 1, 3)
    v = kv[:, :, 1].transpose(0, 2, 1, 3)
    o = attention(q, k, v, key_keep, causal=False)
    o = o.transpose(0, 2, 1, 3).reshape(B * Sq, D)
    out = linear(o, p["o"]["w"], p["o"]["b"], residual=xq_flat, out_dtype=x_q.dtype)
    return out.reshape(B, Sq, D)


def ffn_block(x, p, ln_p):
    """Pre-LN FFN block; LN fused into lin1, residual fused into lin2."""
    B, S, D = x.shape
    x_flat = x.reshape(B * S, D)
    h = linear(x_flat, p["lin1"]["w"], p["lin1"]["b"], activation="relu", ln=ln_p)
    out = linear(h, p["lin2"]["w"], p["lin2"]["b"], residual=x_flat)
    return out.reshape(B, S, D)


def ln3d(x, p):
    B, S, D = x.shape
    return layernorm(x.reshape(B * S, D), p["g"], p["b"]).reshape(B, S, D)


def encoder_layer(x, enc_keep, p, num_heads):
    x = mha_self(x, enc_keep, p["attn"], p["ln1"], num_heads, causal=False)
    x = ffn_block(x, p["ffn"], p["ln2"])
    return x


def decoder_layer(x, dec_keep, enc_out, enc_keep, p, num_heads):
    x = mha_self(x, dec_keep, p["self_attn"], p["ln1"], num_heads, causal=True)
    x = mha_cross(x, enc_out, enc_keep, p["cross_attn"], p["ln2"], num_heads)
    x = ffn_block(x, p["ffn"], p["ln3"])
    return x


def transformer_forward(params, enc_ids, enc_mask, dec_ids, dec_mask, *, num_heads):
    B, Se = enc_ids.shape
    _, Sd = dec_ids.shape
    D = params["enc_embed"].shape[1]
    V = params["lm_head"]["w"].shape[1]

    # key-keep vectors only (1 = real token, 0 = padding); causal term built in-kernel
    enc_keep = enc_mask.astype(jnp.float32).reshape(B, 1, Se)
    dec_keep = dec_mask.astype(jnp.float32).reshape(B, 1, Sd)

    # ----- encode -----
    x = embed(enc_ids, params["enc_embed"], D)
    for lp in params["encoder"]:
        x = encoder_layer(x, enc_keep, lp, num_heads)
    enc_out = ln3d(x, params["enc_final_ln"])

    # ----- decode -----
    y = embed(dec_ids, params["dec_embed"], D)
    for lp in params["decoder"]:
        y = decoder_layer(y, dec_keep, enc_out, enc_keep, lp, num_heads)

    # ----- lm head (decoder final LN fused into the projection when possible) -----
    logits = linear(y.reshape(B * Sd, D), params["lm_head"]["w"], params["lm_head"]["b"],
                    ln=params["dec_final_ln"])
    return logits.reshape(B, Sd, V)


# ----------------------------------------------------------------------------
# Deterministic parameter init (weights stored in bf16, norms/biases in f32)
# ----------------------------------------------------------------------------
class _KeyGen:
    def __init__(self, key):
        self._key = key

    def __call__(self):
        self._key, k = jax.random.split(self._key)
        return k


def _init_linear(kg, din, dout):
    w = jax.random.normal(kg(), (din, dout), jnp.float32) * 0.02
    return {"w": w.astype(jnp.bfloat16), "b": jnp.zeros((1, dout), jnp.float32)}


def _init_ln(dim):
    return {"g": jnp.ones((1, dim), jnp.float32), "b": jnp.zeros((1, dim), jnp.float32)}


def _init_attn_self(kg, dim):
    return {"qkv": _init_linear(kg, dim, 3 * dim), "o": _init_linear(kg, dim, dim)}


def _init_attn_cross(kg, dim):
    return {"q": _init_linear(kg, dim, dim),
            "kv": _init_linear(kg, dim, 2 * dim),
            "o": _init_linear(kg, dim, dim)}


def _init_ffn(kg, dim, ff_dim):
    return {"lin1": _init_linear(kg, dim, ff_dim), "lin2": _init_linear(kg, ff_dim, dim)}


def init_params(key, vocab_size, num_stacks, embed_dim, ff_dim):
    kg = _KeyGen(key)
    params = {
        "enc_embed": jax.random.normal(kg(), (vocab_size, embed_dim), jnp.float32) * 0.02,
        "dec_embed": jax.random.normal(kg(), (vocab_size, embed_dim), jnp.float32) * 0.02,
        "encoder": [],
        "decoder": [],
        "enc_final_ln": _init_ln(embed_dim),
        "dec_final_ln": _init_ln(embed_dim),
        "lm_head": _init_linear(kg, embed_dim, vocab_size),
    }
    for _ in range(num_stacks):
        params["encoder"].append({
            "ln1": _init_ln(embed_dim), "attn": _init_attn_self(kg, embed_dim),
            "ln2": _init_ln(embed_dim), "ffn": _init_ffn(kg, embed_dim, ff_dim),
        })
    for _ in range(num_stacks):
        params["decoder"].append({
            "ln1": _init_ln(embed_dim), "self_attn": _init_attn_self(kg, embed_dim),
            "ln2": _init_ln(embed_dim), "cross_attn": _init_attn_cross(kg, embed_dim),
            "ln3": _init_ln(embed_dim), "ffn": _init_ffn(kg, embed_dim, ff_dim),
        })
    return params


# ----------------------------------------------------------------------------
# Driver
# ----------------------------------------------------------------------------
if __name__ == "__main__":
    VOCAB = 64
    NUM_STACKS = 2
    EMBED_DIM = 32
    NUM_HEADS = 4
    FF_DIM = 64
    B, SE, SD = 2, 8, 8

    key = jax.random.PRNGKey(0)
    k_param, k_enc, k_dec = jax.random.split(key, 3)

    params = init_params(k_param, VOCAB, NUM_STACKS, EMBED_DIM, FF_DIM)

    enc_ids = jax.random.randint(k_enc, (B, SE), 0, VOCAB, dtype=jnp.int32)
    dec_ids = jax.random.randint(k_dec, (B, SD), 0, VOCAB, dtype=jnp.int32)
    # attention masks: 1 = real token, 0 = padding (pad the tail of batch row 1)
    enc_mask = jnp.array([[1] * SE, [1] * (SE - 2) + [0, 0]], dtype=jnp.int32)
    dec_mask = jnp.array([[1] * SD, [1] * (SD - 3) + [0, 0, 0]], dtype=jnp.int32)

    fwd = jax.jit(functools.partial(transformer_forward, num_heads=NUM_HEADS))
    logits = fwd(params, enc_ids, enc_mask, dec_ids, dec_mask)
    logits = jax.block_until_ready(logits)

    assert logits.shape == (B, SD, VOCAB)
    assert bool(jnp.all(jnp.isfinite(logits)))
    print("KERNEL_OK")
</pallas_src>

<mosaic_0001>
module attributes {stable_mosaic.version = 11 : i64} {
  func.func @_linear_kernel(%arg0: i32, %arg1: i32, %arg2: i32, %arg3: memref<16x32xf32, #tpu.memory_space<vmem>>, %arg4: memref<32x96xbf16, #tpu.memory_space<vmem>>, %arg5: memref<1x96xf32, #tpu.memory_space<vmem>>, %arg6: memref<1x32xf32, #tpu.memory_space<vmem>>, %arg7: memref<1x32xf32, #tpu.memory_space<vmem>>, %arg8: memref<16x96xbf16, #tpu.memory_space<vmem>>, %arg9: memref<16x96xf32, #tpu.memory_space<vmem>>) attributes {dimension_semantics = [#tpu.dimension_semantics<parallel>, #tpu.dimension_semantics<parallel>, #tpu.dimension_semantics<arbitrary>], iteration_bounds = array<i64: 1, 1, 1>, scalar_prefetch = 0 : i64, scratch_operands = 1 : i64, tpu.core_type = #tpu.core_type<tc>, window_params = [{transform_indices = @transform_0, window_bounds = array<i64: 16, 32>}, {transform_indices = @transform_1, window_bounds = array<i64: 32, 96>}, {transform_indices = @transform_2, window_bounds = array<i64: 1, 96>}, {transform_indices = @transform_3, window_bounds = array<i64: 1, 32>}, {transform_indices = @transform_4, window_bounds = array<i64: 1, 32>}, {transform_indices = @transform_5, window_bounds = array<i64: 16, 96>}]} {
    %c0_i32 = arith.constant 0 : i32
    %0 = arith.cmpi eq, %arg2, %c0_i32 : i32
    %1 = arith.extui %0 : i1 to i32
    %c0_i32_0 = arith.constant 0 : i32
    %2 = arith.cmpi ne, %1, %c0_i32_0 : i32
    scf.if %2 {
      %cst_19 = arith.constant 0.000000e+00 : f32
      %37 = vector.broadcast %cst_19 : f32 to vector<16x96xf32>
      %c0_20 = arith.constant 0 : index
      %c0_21 = arith.constant 0 : index
      %38 = vector.load %arg9[%c0_20, %c0_21] : memref<16x96xf32, #tpu.memory_space<vmem>>, vector<16x96xf32>
      tpu.vector_store %arg9[%c0_20, %c0_21], %37 {strides = array<i32>} : memref<16x96xf32, #tpu.memory_space<vmem>>, vector<16x96xf32>,
    } else {
    }
    %c0 = arith.constant 0 : index
    %c0_1 = arith.constant 0 : index
    %3 = vector.load %arg3[%c0, %c0_1] : memref<16x32xf32, #tpu.memory_space<vmem>>, vector<16x32xf32>
    %cst = arith.constant dense<0.000000e+00> : vector<16xf32>
    %4 = vector.multi_reduction <add>, %3, %cst [1] : vector<16x32xf32> to vector<16xf32>
    %5 = vector.shape_cast %4 : vector<16xf32> to vector<16x1xf32>
    %cst_2 = arith.constant 3.200000e+01 : f32
    %6 = vector.broadcast %cst_2 : f32 to vector<16x1xf32>
    %7 = arith.divf %5, %6 : vector<16x1xf32>
    %8 = vector.broadcast %7 : vector<16x1xf32> to vector<16x32xf32>
    %9 = arith.subf %3, %8 : vector<16x32xf32>
    %10 = arith.mulf %9, %9 : vector<16x32xf32>
    %cst_3 = arith.constant dense<0.000000e+00> : vector<16xf32>
    %11 = vector.multi_reduction <add>, %10, %cst_3 [1] : vector<16x32xf32> to vector<16xf32>
    %12 = vector.shape_cast %11 : vector<16xf32> to vector<16x1xf32>
    %cst_4 = arith.constant 3.200000e+01 : f32
    %13 = vector.broadcast %cst_4 : f32 to vector<16x1xf32>
    %14 = arith.divf %12, %13 : vector<16x1xf32>
    %15 = vector.broadcast %7 : vector<16x1xf32> to vector<16x32xf32>
    %16 = arith.subf %3, %15 : vector<16x32xf32>
    %cst_5 = arith.constant 9.99999974E-6 : f32
    %17 = vector.broadcast %cst_5 : f32 to vector<16x1xf32>
    %18 = arith.addf %14, %17 : vector<16x1xf32>
    %19 = math.rsqrt %18 : vector<16x1xf32>
    %20 = vector.broadcast %19 : vector<16x1xf32> to vector<16x32xf32>
    %21 = arith.mulf %16, %20 : vector<16x32xf32>
    %c0_6 = arith.constant 0 : index
    %c0_7 = arith.constant 0 : index
    %22 = vector.load %arg6[%c0_6, %c0_7] : memref<1x32xf32, #tpu.memory_space<vmem>>, vector<1x32xf32>
    %23 = vector.broadcast %22 : vector<1x32xf32> to vector<16x32xf32>
    %24 = arith.mulf %21, %23 : vector<16x32xf32>
    %c0_8 = arith.constant 0 : index
    %c0_9 = arith.constant 0 : index
    %25 = vector.load %arg7[%c0_8, %c0_9] : memref<1x32xf32, #tpu.memory_space<vmem>>, vector<1x32xf32>
    %26 = vector.broadcast %25 : vector<1x32xf32> to vector<16x32xf32>
    %27 = arith.addf %24, %26 : vector<16x32xf32>
    %c0_10 = arith.constant 0 : index
    %c0_11 = arith.constant 0 : index
    %28 = vector.load %arg9[%c0_10, %c0_11] : memref<16x96xf32, #tpu.memory_space<vmem>>, vector<16x96xf32>
    %29 = arith.truncf %27 : vector<16x32xf32> to vector<16x32xbf16>
    %c0_12 = arith.constant 0 : index
    %c0_13 = arith.constant 0 : index
    %30 = vector.load %arg4[%c0_12, %c0_13] : memref<32x96xbf16, #tpu.memory_space<vmem>>, vector<32x96xbf16>
    %cst_14 = arith.constant dense<0.000000e+00> : vector<16x96xf32>
    %31 = tpu.matmul %29, %30, %cst_14 {dimension_numbers = #tpu.dot_dimension_numbers<[1], [0], [0], [1], [0, 0, 1, 1], [], []>} : vector<16x32xbf16>, vector<32x96xbf16>, vector<16x96xf32> -> vector<16x96xf32>
    %32 = arith.addf %28, %31 : vector<16x96xf32>
    %c0_15 = arith.constant 0 : index
    %c0_16 = arith.constant 0 : index
    %33 = vector.load %arg9[%c0_15, %c0_16] : memref<16x96xf32, #tpu.memory_space<vmem>>, vector<16x96xf32>
    tpu.vector_store %arg9[%c0_15, %c0_16], %32 {strides = array<i32>} : memref<16x96xf32, #tpu.memory_space<vmem>>, vector<16x96xf32>,
    %c0_i32_17 = arith.constant 0 : i32
    %34 = arith.cmpi eq, %arg2, %c0_i32_17 : i32
    %35 = arith.extui %34 : i1 to i32
    %c0_i32_18 = arith.constant 0 : i32
    %36 = arith.cmpi ne, %35, %c0_i32_18 : i32
    scf.if %36 {
      %c0_19 = arith.constant 0 : index
      %c0_20 = arith.constant 0 : index
      %37 = vector.load %arg9[%c0_19, %c0_20] : memref<16x96xf32, #tpu.memory_space<vmem>>, vector<16x96xf32>
      %c0_21 = arith.constant 0 : index
      %c0_22 = arith.constant 0 : index
      %38 = vector.load %arg5[%c0_21, %c0_22] : memref<1x96xf32, #tpu.memory_space<vmem>>, vector<1x96xf32>
      %39 = vector.broadcast %38 : vector<1x96xf32> to vector<16x96xf32>
      %40 = arith.addf %37, %39 : vector<16x96xf32>
      %41 = arith.truncf %40 : vector<16x96xf32> to vector<16x96xbf16>
      %c0_23 = arith.constant 0 : index
      %c0_24 = arith.constant 0 : index
      %42 = vector.load %arg8[%c0_23, %c0_24] : memref<16x96xbf16, #tpu.memory_space<vmem>>, vector<16x96xbf16>
      tpu.vector_store %arg8[%c0_23, %c0_24], %41 {strides = array<i32>} : memref<16x96xbf16, #tpu.memory_space<vmem>>, vector<16x96xbf16>,
    } else {
    }
    return
  }
  func.func @transform_0(%arg0: i32, %arg1: i32, %arg2: i32) -> (i32, i32) {
    %c0_i32 = arith.constant 0 : i32
    return %arg0, %arg2 : i32, i32
  }
  func.func @transform_1(%arg0: i32, %arg1: i32, %arg2: i32) -> (i32, i32) {
    %c0_i32 = arith.constant 0 : i32
    return %arg2, %arg1 : i32, i32
  }
  func.func @transform_2(%arg0: i32, %arg1: i32, %arg2: i32) -> (i32, i32) {
    %c0_i32 = arith.constant 0 : i32
    %c0_i32_0 = arith.constant 0 : i32
    return %c0_i32, %arg1 : i32, i32
  }
  func.func @transform_3(%arg0: i32, %arg1: i32, %arg2: i32) -> (i32, i32) {
    %c0_i32 = arith.constant 0 : i32
    %c0_i32_0 = arith.constant 0 : i32
    return %c0_i32, %arg2 : i32, i32
  }
  func.func @transform_4(%arg0: i32, %arg1: i32, %arg2: i32) -> (i32, i32) {
    %c0_i32 = arith.constant 0 : i32
    %c0_i32_0 = arith.constant 0 : i32
    return %c0_i32, %arg2 : i32, i32
  }
  func.func @transform_5(%arg0: i32, %arg1: i32, %arg2: i32) -> (i32, i32) {
    %c0_i32 = arith.constant 0 : i32
    return %arg0, %arg1 : i32, i32
  }
}

module attributes {stable_mosaic.version = 11 : i64} {
  func.func @_linear_kernel(%arg0: i32, %arg1: i32, %arg2: i32, %arg3: memref<16x32xbf16, #tpu.memory_space<vmem>>, %arg4: memref<32x32xbf16, #tpu.memory_space<vmem>>, %arg5: memref<1x32xf32, #tpu.memory_space<vmem>>, %arg6: memref<16x32xf32, #tpu.memory_space<vmem>>, %arg7: memref<16x32xf32, #tpu.memory_space<vmem>>, %arg8: memref<16x32xf32, #tpu.memory_space<vmem>>) attributes {dimension_semantics = [#tpu.dimension_semantics<parallel>, #tpu.dimension_semantics<parallel>, #tpu.dimension_semantics<arbitrary>], iteration_bounds = array<i64: 1, 1, 1>, scalar_prefetch = 0 : i64, scratch_operands = 1 : i64, tpu.core_type = #tpu.core_type<tc>, window_params = [{transform_indices = @transform_0, window_bounds = array<i64: 16, 32>}, {transform_indices = @transform_1, window_bounds = array<i64: 32, 32>}, {transform_indices = @transform_2, window_bounds = array<i64: 1, 32>}, {transform_indices = @transform_3, window_bounds = array<i64: 16, 32>}, {transform_indices = @transform_4, window_bounds = array<i64: 16, 32>}]} {
    %c0_i32 = arith.constant 0 : i32
    %0 = arith.cmpi eq, %arg2, %c0_i32 : i32
    %1 = arith.extui %0 : i1 to i32
    %c0_i32_0 = arith.constant 0 : i32
    %2 = arith.cmpi ne, %1, %c0_i32_0 : i32
    scf.if %2 {
      %cst_10 = arith.constant 0.000000e+00 : f32
      %12 = vector.broadcast %cst_10 : f32 to vector<16x32xf32>
      %c0_11 = arith.constant 0 : index
      %c0_12 = arith.constant 0 : index
      %13 = vector.load %arg8[%c0_11, %c0_12] : memref<16x32xf32, #tpu.memory_space<vmem>>, vector<16x32xf32>
      tpu.vector_store %arg8[%c0_11, %c0_12], %12 {strides = array<i32>} : memref<16x32xf32, #tpu.memory_space<vmem>>, vector<16x32xf32>,
    } else {
    }
    %c0 = arith.constant 0 : index
    %c0_1 = arith.constant 0 : index
    %3 = vector.load %arg3[%c0, %c0_1] : memref<16x32xbf16, #tpu.memory_space<vmem>>, vector<16x32xbf16>
    %c0_2 = arith.constant 0 : index
    %c0_3 = arith.constant 0 : index
    %4 = vector.load %arg8[%c0_2, %c0_3] : memref<16x32xf32, #tpu.memory_space<vmem>>, vector<16x32xf32>
    %c0_4 = arith.constant 0 : index
    %c0_5 = arith.constant 0 : index
    %5 = vector.load %arg4[%c0_4, %c0_5] : memref<32x32xbf16, #tpu.memory_space<vmem>>, vector<32x32xbf16>
    %cst = arith.constant dense<0.000000e+00> : vector<16x32xf32>
    %6 = tpu.matmul %3, %5, %cst {dimension_numbers = #tpu.dot_dimension_numbers<[1], [0], [0], [1], [0, 0, 1, 1], [], []>} : vector<16x32xbf16>, vector<32x32xbf16>, vector<16x32xf32> -> vector<16x32xf32>
    %7 = arith.addf %4, %6 : vector<16x32xf32>
    %c0_6 = arith.constant 0 : index
    %c0_7 = arith.constant 0 : index
    %8 = vector.load %arg8[%c0_6, %c0_7] : memref<16x32xf32, #tpu.memory_space<vmem>>, vector<16x32xf32>
    tpu.vector_store %arg8[%c0_6, %c0_7], %7 {strides = array<i32>} : memref<16x32xf32, #tpu.memory_space<vmem>>, vector<16x32xf32>,
    %c0_i32_8 = arith.constant 0 : i32
    %9 = arith.cmpi eq, %arg2, %c0_i32_8 : i32
    %10 = arith.extui %9 : i1 to i32
    %c0_i32_9 = arith.constant 0 : i32
    %11 = arith.cmpi ne, %10, %c0_i32_9 : i32
    scf.if %11 {
      %c0_10 = arith.constant 0 : index
      %c0_11 = arith.constant 0 : index
      %12 = vector.load %arg8[%c0_10, %c0_11] : memref<16x32xf32, #tpu.memory_space<vmem>>, vector<16x32xf32>
      %c0_12 = arith.constant 0 : index
      %c0_13 = arith.constant 0 : index
      %13 = vector.load %arg5[%c0_12, %c0_13] : memref<1x32xf32, #tpu.memory_space<vmem>>, vector<1x32xf32>
      %14 = vector.broadcast %13 : vector<1x32xf32> to vector<16x32xf32>
      %15 = arith.addf %12, %14 : vector<16x32xf32>
      %c0_14 = arith.constant 0 : index
      %c0_15 = arith.constant 0 : index
      %16 = vector.load %arg6[%c0_14, %c0_15] : memref<16x32xf32, #tpu.memory_space<vmem>>, vector<16x32xf32>
      %17 = arith.addf %15, %16 : vector<16x32xf32>
      %c0_16 = arith.constant 0 : index
      %c0_17 = arith.constant 0 : index
      %18 = vector.load %arg7[%c0_16, %c0_17] : memref<16x32xf32, #tpu.memory_space<vmem>>, vector<16x32xf32>
      tpu.vector_store %arg7[%c0_16, %c0_17], %17 {strides = array<i32>} : memref<16x32xf32, #tpu.memory_space<vmem>>, vector<16x32xf32>,
    } else {
    }
    return
  }
  func.func @transform_0(%arg0: i32, %arg1: i32, %arg2: i32) -> (i32, i32) {
    %c0_i32 = arith.constant 0 : i32
    return %arg0, %arg2 : i32, i32
  }
  func.func @transform_1(%arg0: i32, %arg1: i32, %arg2: i32) -> (i32, i32) {
    %c0_i32 = arith.constant 0 : i32
    return %arg2, %arg1 : i32, i32
  }
  func.func @transform_2(%arg0: i32, %arg1: i32, %arg2: i32) -> (i32, i32) {
    %c0_i32 = arith.constant 0 : i32
    %c0_i32_0 = arith.constant 0 : i32
    return %c0_i32, %arg1 : i32, i32
  }
  func.func @transform_3(%arg0: i32, %arg1: i32, %arg2: i32) -> (i32, i32) {
    %c0_i32 = arith.constant 0 : i32
    return %arg0, %arg1 : i32, i32
  }
  func.func @transform_4(%arg0: i32, %arg1: i32, %arg2: i32) -> (i32, i32) {
    %c0_i32 = arith.constant 0 : i32
    return %arg0, %arg1 : i32, i32
  }
}

module attributes {stable_mosaic.version = 11 : i64} {
  func.func @_flash_attn_kernel(%arg0: i32, %arg1: i32, %arg2: i32, %arg3: i32, %arg4: memref<1x1x8x8xbf16, #tpu.memory_space<vmem>>, %arg5: memref<1x1x8x8xbf16, #tpu.memory_space<vmem>>, %arg6: memref<1x1x8x8xbf16, #tpu.memory_space<vmem>>, %arg7: memref<1x1x8xf32, #tpu.memory_space<vmem>>, %arg8: memref<1x1x8x8xbf16, #tpu.memory_space<vmem>>, %arg9: memref<8x1xf32, #tpu.memory_space<vmem>>, %arg10: memref<8x1xf32, #tpu.memory_space<vmem>>, %arg11: memref<8x8xf32, #tpu.memory_space<vmem>>) attributes {dimension_semantics = [#tpu.dimension_semantics<parallel>, #tpu.dimension_semantics<parallel>, #tpu.dimension_semantics<parallel>, #tpu.dimension_semantics<arbitrary>], iteration_bounds = array<i64: 2, 4, 1, 1>, scalar_prefetch = 0 : i64, scratch_operands = 3 : i64, tpu.core_type = #tpu.core_type<tc>, window_params = [{transform_indices = @transform_0, window_bounds = array<i64: 1, 1, 8, 8>}, {transform_indices = @transform_1, window_bounds = array<i64: 1, 1, 8, 8>}, {transform_indices = @transform_2, window_bounds = array<i64: 1, 1, 8, 8>}, {transform_indices = @transform_3, window_bounds = array<i64: 1, 1, 8>}, {transform_indices = @transform_4, window_bounds = array<i64: 1, 1, 8, 8>}]} {
    %c0_i32 = arith.constant 0 : i32
    %0 = arith.cmpi eq, %arg3, %c0_i32 : i32
    %1 = arith.extui %0 : i1 to i32
    %c0_i32_0 = arith.constant 0 : i32
    %2 = arith.cmpi ne, %1, %c0_i32_0 : i32
    scf.if %2 {
      %cst_37 = arith.constant 0xFF800000 : f32
      %57 = vector.broadcast %cst_37 : f32 to vector<8x1xf32>
      %c0_38 = arith.constant 0 : index
      %c0_39 = arith.constant 0 : index
      %58 = vector.load %arg9[%c0_38, %c0_39] : memref<8x1xf32, #tpu.memory_space<vmem>>, vector<8x1xf32>
      tpu.vector_store %arg9[%c0_38, %c0_39], %57 {strides = array<i32>} : memref<8x1xf32, #tpu.memory_space<vmem>>, vector<8x1xf32>,
      %cst_40 = arith.constant 0.000000e+00 : f32
      %59 = vector.broadcast %cst_40 : f32 to vector<8x1xf32>
      %c0_41 = arith.constant 0 : index
      %c0_42 = arith.constant 0 : index
      %60 = vector.load %arg10[%c0_41, %c0_42] : memref<8x1xf32, #tpu.memory_space<vmem>>, vector<8x1xf32>
      tpu.vector_store %arg10[%c0_41, %c0_42], %59 {strides = array<i32>} : memref<8x1xf32, #tpu.memory_space<vmem>>, vector<8x1xf32>,
      %cst_43 = arith.constant 0.000000e+00 : f32
      %61 = vector.broadcast %cst_43 : f32 to vector<8x8xf32>
      %c0_44 = arith.constant 0 : index
      %c0_45 = arith.constant 0 : index
      %62 = vector.load %arg11[%c0_44, %c0_45] : memref<8x8xf32, #tpu.memory_space<vmem>>, vector<8x8xf32>
      tpu.vector_store %arg11[%c0_44, %c0_45], %61 {strides = array<i32>} : memref<8x8xf32, #tpu.memory_space<vmem>>, vector<8x8xf32>,
    } else {
    }
    %c0 = arith.constant 0 : index
    %c0_1 = arith.constant 0 : index
    %c0_2 = arith.constant 0 : index
    %c0_3 = arith.constant 0 : index
    %3 = vector.load %arg4[%c0, %c0_1, %c0_2, %c0_3] : memref<1x1x8x8xbf16, #tpu.memory_space<vmem>>, vector<1x1x8x8xbf16>
    %4 = vector.shape_cast %3 : vector<1x1x8x8xbf16> to vector<8x8xbf16>
    %c0_4 = arith.constant 0 : index
    %c0_5 = arith.constant 0 : index
    %c0_6 = arith.constant 0 : index
    %c0_7 = arith.constant 0 : index
    %5 = vector.load %arg5[%c0_4, %c0_5, %c0_6, %c0_7] : memref<1x1x8x8xbf16, #tpu.memory_space<vmem>>, vector<1x1x8x8xbf16>
    %6 = vector.shape_cast %5 : vector<1x1x8x8xbf16> to vector<8x8xbf16>
    %cst = arith.constant dense<0.000000e+00> : vector<8x8xf32>
    %7 = tpu.matmul %4, %6, %cst {dimension_numbers = #tpu.dot_dimension_numbers<[1], [1], [0], [0], [0, 0, 1, 0], [], []>} : vector<8x8xbf16>, vector<8x8xbf16>, vector<8x8xf32> -> vector<8x8xf32>
    %cst_8 = arith.constant 0.353553385 : f32
    %8 = vector.broadcast %cst_8 : f32 to vector<8x8xf32>
    %9 = arith.mulf %7, %8 : vector<8x8xf32>
    %c0_9 = arith.constant 0 : index
    %c0_10 = arith.constant 0 : index
    %c0_11 = arith.constant 0 : index
    %10 = vector.load %arg7[%c0_9, %c0_10, %c0_11] : memref<1x1x8xf32, #tpu.memory_space<vmem>>, vector<1x1x8xf32>
    %11 = vector.shape_cast %10 : vector<1x1x8xf32> to vector<1x8xf32>
    %cst_12 = arith.constant 1.000000e+00 : f32
    %12 = vector.broadcast %cst_12 : f32 to vector<1x8xf32>
    %13 = arith.subf %12, %11 : vector<1x8xf32>
    %cst_13 = arith.constant -1.000000e+09 : f32
    %14 = vector.broadcast %cst_13 : f32 to vector<1x8xf32>
    %15 = arith.mulf %13, %14 : vector<1x8xf32>
    %16 = vector.broadcast %15 : vector<1x8xf32> to vector<8x8xf32>
    %17 = arith.addf %9, %16 : vector<8x8xf32>
    %c8_i32 = arith.constant 8 : i32
    %18 = arith.muli %arg2, %c8_i32 : i32
    %19 = tpu.iota {dimensions = array<i32: 0>} : vector<8x8xi32>
    %20 = vector.broadcast %18 : i32 to vector<8x8xi32>
    %21 = arith.addi %20, %19 : vector<8x8xi32>
    %c8_i32_14 = arith.constant 8 : i32
    %22 = arith.muli %arg3, %c8_i32_14 : i32
    %23 = tpu.iota {dimensions = array<i32: 1>} : vector<8x8xi32>
    %24 = vector.broadcast %22 : i32 to vector<8x8xi32>
    %25 = arith.addi %24, %23 : vector<8x8xi32>
    %26 = arith.cmpi sge, %21, %25 : vector<8x8xi32>
    %cst_15 = arith.constant -1.000000e+09 : f32
    %27 = vector.broadcast %cst_15 : f32 to vector<8x8xf32>
    %28 = arith.select %26, %17, %27 : vector<8x8xi1>, vector<8x8xf32>
    %c0_16 = arith.constant 0 : index
    %c0_17 = arith.constant 0 : index
    %29 = vector.load %arg9[%c0_16, %c0_17] : memref<8x1xf32, #tpu.memory_space<vmem>>, vector<8x1xf32>
    %cst_18 = arith.constant dense<0xFF800000> : vector<8xf32>
    %30 = vector.multi_reduction <maximumf>, %28, %cst_18 [1] : vector<8x8xf32> to vector<8xf32>
    %31 = vector.shape_cast %30 : vector<8xf32> to vector<8x1xf32>
    %32 = arith.maximumf %29, %31 : vector<8x1xf32>
    %33 = arith.subf %29, %32 : vector<8x1xf32>
    %34 = math.exp %33 : vector<8x1xf32>
    %35 = vector.broadcast %32 : vector<8x1xf32> to vector<8x8xf32>
    %36 = arith.subf %28, %35 : vector<8x8xf32>
    %37 = math.exp %36 : vector<8x8xf32>
    %c0_19 = arith.constant 0 : index
    %c0_20 = arith.constant 0 : index
    %38 = vector.load %arg10[%c0_19, %c0_20] : memref<8x1xf32, #tpu.memory_space<vmem>>, vector<8x1xf32>
    %39 = arith.mulf %34, %38 : vector<8x1xf32>
    %cst_21 = arith.constant dense<0.000000e+00> : vector<8xf32>
    %40 = vector.multi_reduction <add>, %37, %cst_21 [1] : vector<8x8xf32> to vector<8xf32>
    %41 = vector.shape_cast %40 : vector<8xf32> to vector<8x1xf32>
    %42 = arith.addf %39, %41 : vector<8x1xf32>
    %c0_22 = arith.constant 0 : index
    %c0_23 = arith.constant 0 : index
    %43 = vector.load %arg10[%c0_22, %c0_23] : memref<8x1xf32, #tpu.memory_space<vmem>>, vector<8x1xf32>
    tpu.vector_store %arg10[%c0_22, %c0_23], %42 {strides = array<i32>} : memref<8x1xf32, #tpu.memory_space<vmem>>, vector<8x1xf32>,
    %c0_24 = arith.constant 0 : index
    %c0_25 = arith.constant 0 : index
    %44 = vector.load %arg11[%c0_24, %c0_25] : memref<8x8xf32, #tpu.memory_space<vmem>>, vector<8x8xf32>
    %45 = vector.broadcast %34 : vector<8x1xf32> to vector<8x8xf32>
    %46 = arith.mulf %45, %44 : vector<8x8xf32>
    %47 = arith.truncf %37 : vector<8x8xf32> to vector<8x8xbf16>
    %c0_26 = arith.constant 0 : index
    %c0_27 = arith.constant 0 : index
    %c0_28 = arith.constant 0 : index
    %c0_29 = arith.constant 0 : index
    %48 = vector.load %arg6[%c0_26, %c0_27, %c0_28, %c0_29] : memref<1x1x8x8xbf16, #tpu.memory_space<vmem>>, vector<1x1x8x8xbf16>
    %49 = vector.shape_cast %48 : vector<1x1x8x8xbf16> to vector<8x8xbf16>
    %cst_30 = arith.constant dense<0.000000e+00> : vector<8x8xf32>
    %50 = tpu.matmul %47, %49, %cst_30 {dimension_numbers = #tpu.dot_dimension_numbers<[1], [0], [0], [1], [0, 0, 1, 1], [], []>} : vector<8x8xbf16>, vector<8x8xbf16>, vector<8x8xf32> -> vector<8x8xf32>
    %51 = arith.addf %46, %50 : vector<8x8xf32>
    %c0_31 = arith.constant 0 : index
    %c0_32 = arith.constant 0 : index
    %52 = vector.load %arg11[%c0_31, %c0_32] : memref<8x8xf32, #tpu.memory_space<vmem>>, vector<8x8xf32>
    tpu.vector_store %arg11[%c0_31, %c0_32], %51 {strides = array<i32>} : memref<8x8xf32, #tpu.memory_space<vmem>>, vector<8x8xf32>,
    %c0_33 = arith.constant 0 : index
    %c0_34 = arith.constant 0 : index
    %53 = vector.load %arg9[%c0_33, %c0_34] : memref<8x1xf32, #tpu.memory_space<vmem>>, vector<8x1xf32>
    tpu.vector_store %arg9[%c0_33, %c0_34], %32 {strides = array<i32>} : memref<8x1xf32, #tpu.memory_space<vmem>>, vector<8x1xf32>,
    %c0_i32_35 = arith.constant 0 : i32
    %54 = arith.cmpi eq, %arg3, %c0_i32_35 : i32
    %55 = arith.extui %54 : i1 to i32
    %c0_i32_36 = arith.constant 0 : i32
    %56 = arith.cmpi ne, %55, %c0_i32_36 : i32
    scf.if %56 {
      %c0_37 = arith.constant 0 : index
      %c0_38 = arith.constant 0 : index
      %57 = vector.load %arg11[%c0_37, %c0_38] : memref<8x8xf32, #tpu.memory_space<vmem>>, vector<8x8xf32>
      %c0_39 = arith.constant 0 : index
      %c0_40 = arith.constant 0 : index
      %58 = vector.load %arg10[%c0_39, %c0_40] : memref<8x1xf32, #tpu.memory_space<vmem>>, vector<8x1xf32>
      %59 = vector.broadcast %58 : vector<8x1xf32> to vector<8x8xf32>
      %60 = arith.divf %57, %59 : vector<8x8xf32>
      %61 = arith.truncf %60 : vector<8x8xf32> to vector<8x8xbf16>
      %c0_41 = arith.constant 0 : index
      %c0_42 = arith.constant 0 : index
      %c0_43 = arith.constant 0 : index
      %c0_44 = arith.constant 0 : index
      %62 = vector.load %arg8[%c0_41, %c0_42, %c0_43, %c0_44] : memref<1x1x8x8xbf16, #tpu.memory_space<vmem>>, vector<1x1x8x8xbf16>
      %63 = vector.shape_cast %62 : vector<1x1x8x8xbf16> to vector<8x8xbf16>
      %64 = vector.shape_cast %61 : vector<8x8xbf16> to vector<1x1x8x8xbf16>
      tpu.vector_store %arg8[%c0_41, %c0_42, %c0_43, %c0_44], %64 {strides = array<i32>} : memref<1x1x8x8xbf16, #tpu.memory_space<vmem>>, vector<1x1x8x8xbf16>,
    } else {
    }
    return
  }
  func.func @transform_0(%arg0: i32, %arg1: i32, %arg2: i32, %arg3: i32) -> (i32, i32, i32, i32) {
    %c0_i32 = arith.constant 0 : i32
    %c0_i32_0 = arith.constant 0 : i32
    return %arg0, %arg1, %arg2, %c0_i32 : i32, i32, i32, i32
  }
  func.func @transform_1(%arg0: i32, %arg1: i32, %arg2: i32, %arg3: i32) -> (i32, i32, i32, i32) {
    %c0_i32 = arith.constant 0 : i32
    %c0_i32_0 = arith.constant 0 : i32
    return %arg0, %arg1, %arg3, %c0_i32 : i32, i32, i32, i32
  }
  func.func @transform_2(%arg0: i32, %arg1: i32, %arg2: i32, %arg3: i32) -> (i32, i32, i32, i32) {
    %c0_i32 = arith.constant 0 : i32
    %c0_i32_0 = arith.constant 0 : i32
    return %arg0, %arg1, %arg3, %c0_i32 : i32, i32, i32, i32
  }
  func.func @transform_3(%arg0: i32, %arg1: i32, %arg2: i32, %arg3: i32) -> (i32, i32, i32) {
    %c0_i32 = arith.constant 0 : i32
    %c0_i32_0 = arith.constant 0 : i32
    return %arg0, %c0_i32, %arg3 : i32, i32, i32
  }
  func.func @transform_4(%arg0: i32, %arg1: i32, %arg2: i32, %arg3: i32) -> (i32, i32, i32, i32) {
    %c0_i32 = arith.constant 0 : i32
    %c0_i32_0 = arith.constant 0 : i32
    return %arg0, %arg1, %arg2, %c0_i32 : i32, i32, i32, i32
  }
}

module attributes {stable_mosaic.version = 11 : i64} {
  func.func @_linear_kernel(%arg0: i32, %arg1: i32, %arg2: i32, %arg3: memref<16x32xf32, #tpu.memory_space<vmem>>, %arg4: memref<32x32xbf16, #tpu.memory_space<vmem>>, %arg5: memref<1x32xf32, #tpu.memory_space<vmem>>, %arg6: memref<1x32xf32, #tpu.memory_space<vmem>>, %arg7: memref<1x32xf32, #tpu.memory_space<vmem>>, %arg8: memref<16x32xbf16, #tpu.memory_space<vmem>>, %arg9: memref<16x32xf32, #tpu.memory_space<vmem>>) attributes {dimension_semantics = [#tpu.dimension_semantics<parallel>, #tpu.dimension_semantics<parallel>, #tpu.dimension_semantics<arbitrary>], iteration_bounds = array<i64: 1, 1, 1>, scalar_prefetch = 0 : i64, scratch_operands = 1 : i64, tpu.core_type = #tpu.core_type<tc>, window_params = [{transform_indices = @transform_0, window_bounds = array<i64: 16, 32>}, {transform_indices = @transform_1, window_bounds = array<i64: 32, 32>}, {transform_indices = @transform_2, window_bounds = array<i64: 1, 32>}, {transform_indices = @transform_3, window_bounds = array<i64: 1, 32>}, {transform_indices = @transform_4, window_bounds = array<i64: 1, 32>}, {transform_indices = @transform_5, window_bounds = array<i64: 16, 32>}]} {
    %c0_i32 = arith.constant 0 : i32
    %0 = arith.cmpi eq, %arg2, %c0_i32 : i32
    %1 = arith.extui %0 : i1 to i32
    %c0_i32_0 = arith.constant 0 : i32
    %2 = arith.cmpi ne, %1, %c0_i32_0 : i32
    scf.if %2 {
      %cst_19 = arith.constant 0.000000e+00 : f32
      %37 = vector.broadcast %cst_19 : f32 to vector<16x32xf32>
      %c0_20 = arith.constant 0 : index
      %c0_21 = arith.constant 0 : index
      %38 = vector.load %arg9[%c0_20, %c0_21] : memref<16x32xf32, #tpu.memory_space<vmem>>, vector<16x32xf32>
      tpu.vector_store %arg9[%c0_20, %c0_21], %37 {strides = array<i32>} : memref<16x32xf32, #tpu.memory_space<vmem>>, vector<16x32xf32>,
    } else {
    }
    %c0 = arith.constant 0 : index
    %c0_1 = arith.constant 0 : index
    %3 = vector.load %arg3[%c0, %c0_1] : memref<16x32xf32, #tpu.memory_space<vmem>>, vector<16x32xf32>
    %cst = arith.constant dense<0.000000e+00> : vector<16xf32>
    %4 = vector.multi_reduction <add>, %3, %cst [1] : vector<16x32xf32> to vector<16xf32>
    %5 = vector.shape_cast %4 : vector<16xf32> to vector<16x1xf32>
    %cst_2 = arith.constant 3.200000e+01 : f32
    %6 = vector.broadcast %cst_2 : f32 to vector<16x1xf32>
    %7 = arith.divf %5, %6 : vector<16x1xf32>
    %8 = vector.broadcast %7 : vector<16x1xf32> to vector<16x32xf32>
    %9 = arith.subf %3, %8 : vector<16x32xf32>
    %10 = arith.mulf %9, %9 : vector<16x32xf32>
    %cst_3 = arith.constant dense<0.000000e+00> : vector<16xf32>
    %11 = vector.multi_reduction <add>, %10, %cst_3 [1] : vector<16x32xf32> to vector<16xf32>
    %12 = vector.shape_cast %11 : vector<16xf32> to vector<16x1xf32>
    %cst_4 = arith.constant 3.200000e+01 : f32
    %13 = vector.broadcast %cst_4 : f32 to vector<16x1xf32>
    %14 = arith.divf %12, %13 : vector<16x1xf32>
    %15 = vector.broadcast %7 : vector<16x1xf32> to vector<16x32xf32>
    %16 = arith.subf %3, %15 : vector<16x32xf32>
    %cst_5 = arith.constant 9.99999974E-6 : f32
    %17 = vector.broadcast %cst_5 : f32 to vector<16x1xf32>
    %18 = arith.addf %14, %17 : vector<16x1xf32>
    %19 = math.rsqrt %18 : vector<16x1xf32>
    %20 = vector.broadcast %19 : vector<16x1xf32> to vector<16x32xf32>
    %21 = arith.mulf %16, %20 : vector<16x32xf32>
    %c0_6 = arith.constant 0 : index
    %c0_7 = arith.constant 0 : index
    %22 = vector.load %arg6[%c0_6, %c0_7] : memref<1x32xf32, #tpu.memory_space<vmem>>, vector<1x32xf32>
    %23 = vector.broadcast %22 : vector<1x32xf32> to vector<16x32xf32>
    %24 = arith.mulf %21, %23 : vector<16x32xf32>
    %c0_8 = arith.constant 0 : index
    %c0_9 = arith.constant 0 : index
    %25 = vector.load %arg7[%c0_8, %c0_9] : memref<1x32xf32, #tpu.memory_space<vmem>>, vector<1x32xf32>
    %26 = vector.broadcast %25 : vector<1x32xf32> to vector<16x32xf32>
    %27 = arith.addf %24, %26 : vector<16x32xf32>
    %c0_10 = arith.constant 0 : index
    %c0_11 = arith.constant 0 : index
    %28 = vector.load %arg9[%c0_10, %c0_11] : memref<16x32xf32, #tpu.memory_space<vmem>>, vector<16x32xf32>
    %29 = arith.truncf %27 : vector<16x32xf32> to vector<16x32xbf16>
    %c0_12 = arith.constant 0 : index
    %c0_13 = arith.constant 0 : index
    %30 = vector.load %arg4[%c0_12, %c0_13] : memref<32x32xbf16, #tpu.memory_space<vmem>>, vector<32x32xbf16>
    %cst_14 = arith.constant dense<0.000000e+00> : vector<16x32xf32>
    %31 = tpu.matmul %29, %30, %cst_14 {dimension_numbers = #tpu.dot_dimension_numbers<[1], [0], [0], [1], [0, 0, 1, 1], [], []>} : vector<16x32xbf16>, vector<32x32xbf16>, vector<16x32xf32> -> vector<16x32xf32>
    %32 = arith.addf %28, %31 : vector<16x32xf32>
    %c0_15 = arith.constant 0 : index
    %c0_16 = arith.constant 0 : index
    %33 = vector.load %arg9[%c0_15, %c0_16] : memref<16x32xf32, #tpu.memory_space<vmem>>, vector<16x32xf32>
    tpu.vector_store %arg9[%c0_15, %c0_16], %32 {strides = array<i32>} : memref<16x32xf32, #tpu.memory_space<vmem>>, vector<16x32xf32>,
    %c0_i32_17 = arith.constant 0 : i32
    %34 = arith.cmpi eq, %arg2, %c0_i32_17 : i32
    %35 = arith.extui %34 : i1 to i32
    %c0_i32_18 = arith.constant 0 : i32
    %36 = arith.cmpi ne, %35, %c0_i32_18 : i32
    scf.if %36 {
      %c0_19 = arith.constant 0 : index
      %c0_20 = arith.constant 0 : index
      %37 = vector.load %arg9[%c0_19, %c0_20] : memref<16x32xf32, #tpu.memory_space<vmem>>, vector<16x32xf32>
      %c0_21 = arith.constant 0 : index
      %c0_22 = arith.constant 0 : index
      %38 = vector.load %arg5[%c0_21, %c0_22] : memref<1x32xf32, #tpu.memory_space<vmem>>, vector<1x32xf32>
      %39 = vector.broadcast %38 : vector<1x32xf32> to vector<16x32xf32>
      %40 = arith.addf %37, %39 : vector<16x32xf32>
      %41 = arith.truncf %40 : vector<16x32xf32> to vector<16x32xbf16>
      %c0_23 = arith.constant 0 : index
      %c0_24 = arith.constant 0 : index
      %42 = vector.load %arg8[%c0_23, %c0_24] : memref<16x32xbf16, #tpu.memory_space<vmem>>, vector<16x32xbf16>
      tpu.vector_store %arg8[%c0_23, %c0_24], %41 {strides = array<i32>} : memref<16x32xbf16, #tpu.memory_space<vmem>>, vector<16x32xbf16>,
    } else {
    }
    return
  }
  func.func @transform_0(%arg0: i32, %arg1: i32, %arg2: i32) -> (i32, i32) {
    %c0_i32 = arith.constant 0 : i32
    return %arg0, %arg2 : i32, i32
  }
  func.func @transform_1(%arg0: i32, %arg1: i32, %arg2: i32) -> (i32, i32) {
    %c0_i32 = arith.constant 0 : i32
    return %arg2, %arg1 : i32, i32
  }
  func.func @transform_2(%arg0: i32, %arg1: i32, %arg2: i32) -> (i32, i32) {
    %c0_i32 = arith.constant 0 : i32
    %c0_i32_0 = arith.constant 0 : i32
    return %c0_i32, %arg1 : i32, i32
  }
  func.func @transform_3(%arg0: i32, %arg1: i32, %arg2: i32) -> (i32, i32) {
    %c0_i32 = arith.constant 0 : i32
    %c0_i32_0 = arith.constant 0 : i32
    return %c0_i32, %arg2 : i32, i32
  }
  func.func @transform_4(%arg0: i32, %arg1: i32, %arg2: i32) -> (i32, i32) {
    %c0_i32 = arith.constant 0 : i32
    %c0_i32_0 = arith.constant 0 : i32
    return %c0_i32, %arg2 : i32, i32
  }
  func.func @transform_5(%arg0: i32, %arg1: i32, %arg2: i32) -> (i32, i32) {
    %c0_i32 = arith.constant 0 : i32
    return %arg0, %arg1 : i32, i32
  }
}

module attributes {stable_mosaic.version = 11 : i64} {
  func.func @_linear_kernel(%arg0: i32, %arg1: i32, %arg2: i32, %arg3: memref<16x32xf32, #tpu.memory_space<vmem>>, %arg4: memref<32x64xbf16, #tpu.memory_space<vmem>>, %arg5: memref<1x64xf32, #tpu.memory_space<vmem>>, %arg6: memref<1x32xf32, #tpu.memory_space<vmem>>, %arg7: memref<1x32xf32, #tpu.memory_space<vmem>>, %arg8: memref<16x64xf32, #tpu.memory_space<vmem>>, %arg9: memref<16x64xf32, #tpu.memory_space<vmem>>) attributes {dimension_semantics = [#tpu.dimension_semantics<parallel>, #tpu.dimension_semantics<parallel>, #tpu.dimension_semantics<arbitrary>], iteration_bounds = array<i64: 1, 1, 1>, scalar_prefetch = 0 : i64, scratch_operands = 1 : i64, tpu.core_type = #tpu.core_type<tc>, window_params = [{transform_indices = @transform_0, window_bounds = array<i64: 16, 32>}, {transform_indices = @transform_1, window_bounds = array<i64: 32, 64>}, {transform_indices = @transform_2, window_bounds = array<i64: 1, 64>}, {transform_indices = @transform_3, window_bounds = array<i64: 1, 32>}, {transform_indices = @transform_4, window_bounds = array<i64: 1, 32>}, {transform_indices = @transform_5, window_bounds = array<i64: 16, 64>}]} {
    %c0_i32 = arith.constant 0 : i32
    %0 = arith.cmpi eq, %arg2, %c0_i32 : i32
    %1 = arith.extui %0 : i1 to i32
    %c0_i32_0 = arith.constant 0 : i32
    %2 = arith.cmpi ne, %1, %c0_i32_0 : i32
    scf.if %2 {
      %cst_19 = arith.constant 0.000000e+00 : f32
      %37 = vector.broadcast %cst_19 : f32 to vector<16x64xf32>
      %c0_20 = arith.constant 0 : index
      %c0_21 = arith.constant 0 : index
      %38 = vector.load %arg9[%c0_20, %c0_21] : memref<16x64xf32, #tpu.memory_space<vmem>>, vector<16x64xf32>
      tpu.vector_store %arg9[%c0_20, %c0_21], %37 {strides = array<i32>} : memref<16x64xf32, #tpu.memory_space<vmem>>, vector<16x64xf32>,
    } else {
    }
    %c0 = arith.constant 0 : index
    %c0_1 = arith.constant 0 : index
    %3 = vector.load %arg3[%c0, %c0_1] : memref<16x32xf32, #tpu.memory_space<vmem>>, vector<16x32xf32>
    %cst = arith.constant dense<0.000000e+00> : vector<16xf32>
    %4 = vector.multi_reduction <add>, %3, %cst [1] : vector<16x32xf32> to vector<16xf32>
    %5 = vector.shape_cast %4 : vector<16xf32> to vector<16x1xf32>
    %cst_2 = arith.constant 3.200000e+01 : f32
    %6 = vector.broadcast %cst_2 : f32 to vector<16x1xf32>
    %7 = arith.divf %5, %6 : vector<16x1xf32>
    %8 = vector.broadcast %7 : vector<16x1xf32> to vector<16x32xf32>
    %9 = arith.subf %3, %8 : vector<16x32xf32>
    %10 = arith.mulf %9, %9 : vector<16x32xf32>
    %cst_3 = arith.constant dense<0.000000e+00> : vector<16xf32>
    %11 = vector.multi_reduction <add>, %10, %cst_3 [1] : vector<16x32xf32> to vector<16xf32>
    %12 = vector.shape_cast %11 : vector<16xf32> to vector<16x1xf32>
    %cst_4 = arith.constant 3.200000e+01 : f32
    %13 = vector.broadcast %cst_4 : f32 to vector<16x1xf32>
    %14 = arith.divf %12, %13 : vector<16x1xf32>
    %15 = vector.broadcast %7 : vector<16x1xf32> to vector<16x32xf32>
    %16 = arith.subf %3, %15 : vector<16x32xf32>
    %cst_5 = arith.constant 9.99999974E-6 : f32
    %17 = vector.broadcast %cst_5 : f32 to vector<16x1xf32>
    %18 = arith.addf %14, %17 : vector<16x1xf32>
    %19 = math.rsqrt %18 : vector<16x1xf32>
    %20 = vector.broadcast %19 : vector<16x1xf32> to vector<16x32xf32>
    %21 = arith.mulf %16, %20 : vector<16x32xf32>
    %c0_6 = arith.constant 0 : index
    %c0_7 = arith.constant 0 : index
    %22 = vector.load %arg6[%c0_6, %c0_7] : memref<1x32xf32, #tpu.memory_space<vmem>>, vector<1x32xf32>
    %23 = vector.broadcast %22 : vector<1x32xf32> to vector<16x32xf32>
    %24 = arith.mulf %21, %23 : vector<16x32xf32>
    %c0_8 = arith.constant 0 : index
    %c0_9 = arith.constant 0 : index
    %25 = vector.load %arg7[%c0_8, %c0_9] : memref<1x32xf32, #tpu.memory_space<vmem>>, vector<1x32xf32>
    %26 = vector.broadcast %25 : vector<1x32xf32> to vector<16x32xf32>
    %27 = arith.addf %24, %26 : vector<16x32xf32>
    %c0_10 = arith.constant 0 : index
    %c0_11 = arith.constant 0 : index
    %28 = vector.load %arg9[%c0_10, %c0_11] : memref<16x64xf32, #tpu.memory_space<vmem>>, vector<16x64xf32>
    %29 = arith.truncf %27 : vector<16x32xf32> to vector<16x32xbf16>
    %c0_12 = arith.constant 0 : index
    %c0_13 = arith.constant 0 : index
    %30 = vector.load %arg4[%c0_12, %c0_13] : memref<32x64xbf16, #tpu.memory_space<vmem>>, vector<32x64xbf16>
    %cst_14 = arith.constant dense<0.000000e+00> : vector<16x64xf32>
    %31 = tpu.matmul %29, %30, %cst_14 {dimension_numbers = #tpu.dot_dimension_numbers<[1], [0], [0], [1], [0, 0, 1, 1], [], []>} : vector<16x32xbf16>, vector<32x64xbf16>, vector<16x64xf32> -> vector<16x64xf32>
    %32 = arith.addf %28, %31 : vector<16x64xf32>
    %c0_15 = arith.constant 0 : index
    %c0_16 = arith.constant 0 : index
    %33 = vector.load %arg9[%c0_15, %c0_16] : memref<16x64xf32, #tpu.memory_space<vmem>>, vector<16x64xf32>
    tpu.vector_store %arg9[%c0_15, %c0_16], %32 {strides = array<i32>} : memref<16x64xf32, #tpu.memory_space<vmem>>, vector<16x64xf32>,
    %c0_i32_17 = arith.constant 0 : i32
    %34 = arith.cmpi eq, %arg2, %c0_i32_17 : i32
    %35 = arith.extui %34 : i1 to i32
    %c0_i32_18 = arith.constant 0 : i32
    %36 = arith.cmpi ne, %35, %c0_i32_18 : i32
    scf.if %36 {
      %c0_19 = arith.constant 0 : index
      %c0_20 = arith.constant 0 : index
      %37 = vector.load %arg9[%c0_19, %c0_20] : memref<16x64xf32, #tpu.memory_space<vmem>>, vector<16x64xf32>
      %c0_21 = arith.constant 0 : index
      %c0_22 = arith.constant 0 : index
      %38 = vector.load %arg5[%c0_21, %c0_22] : memref<1x64xf32, #tpu.memory_space<vmem>>, vector<1x64xf32>
      %39 = vector.broadcast %38 : vector<1x64xf32> to vector<16x64xf32>
      %40 = arith.addf %37, %39 : vector<16x64xf32>
      %cst_23 = arith.constant 0.000000e+00 : f32
      %41 = vector.broadcast %cst_23 : f32 to vector<16x64xf32>
      %42 = arith.maximumf %40, %41 : vector<16x64xf32>
      %c0_24 = arith.constant 0 : index
      %c0_25 = arith.constant 0 : index
      %43 = vector.load %arg8[%c0_24, %c0_25] : memref<16x64xf32, #tpu.memory_space<vmem>>, vector<16x64xf32>
      tpu.vector_store %arg8[%c0_24, %c0_25], %42 {strides = array<i32>} : memref<16x64xf32, #tpu.memory_space<vmem>>, vector<16x64xf32>,
    } else {
    }
    return
  }
  func.func @transform_0(%arg0: i32, %arg1: i32, %arg2: i32) -> (i32, i32) {
    %c0_i32 = arith.constant 0 : i32
    return %arg0, %arg2 : i32, i32
  }
  func.func @transform_1(%arg0: i32, %arg1: i32, %arg2: i32) -> (i32, i32) {
    %c0_i32 = arith.constant 0 : i32
    return %arg2, %arg1 : i32, i32
  }
  func.func @transform_2(%arg0: i32, %arg1: i32, %arg2: i32) -> (i32, i32) {
    %c0_i32 = arith.constant 0 : i32
    %c0_i32_0 = arith.constant 0 : i32
    return %c0_i32, %arg1 : i32, i32
  }
  func.func @transform_3(%arg0: i32, %arg1: i32, %arg2: i32) -> (i32, i32) {
    %c0_i32 = arith.constant 0 : i32
    %c0_i32_0 = arith.constant 0 : i32
    return %c0_i32, %arg2 : i32, i32
  }
  func.func @transform_4(%arg0: i32, %arg1: i32, %arg2: i32) -> (i32, i32) {
    %c0_i32 = arith.constant 0 : i32
    %c0_i32_0 = arith.constant 0 : i32
    return %c0_i32, %arg2 : i32, i32
  }
  func.func @transform_5(%arg0: i32, %arg1: i32, %arg2: i32) -> (i32, i32) {
    %c0_i32 = arith.constant 0 : i32
    return %arg0, %arg1 : i32, i32
  }
}

module attributes {stable_mosaic.version = 11 : i64} {
  func.func @_layernorm_kernel(%arg0: i32, %arg1: memref<16x32xf32, #tpu.memory_space<vmem>>, %arg2: memref<1x32xf32, #tpu.memory_space<vmem>>, %arg3: memref<1x32xf32, #tpu.memory_space<vmem>>, %arg4: memref<16x32xf32, #tpu.memory_space<vmem>>) attributes {dimension_semantics = [#tpu.dimension_semantics<parallel>], iteration_bounds = array<i64: 1>, scalar_prefetch = 0 : i64, scratch_operands = 0 : i64, tpu.core_type = #tpu.core_type<tc>, window_params = [{transform_indices = @transform_0, window_bounds = array<i64: 16, 32>}, {pipeline_mode = #tpu.pipeline_mode<synchronous>, transform_indices = @transform_1, window_bounds = array<i64: 1, 32>}, {pipeline_mode = #tpu.pipeline_mode<synchronous>, transform_indices = @transform_2, window_bounds = array<i64: 1, 32>}, {transform_indices = @transform_3, window_bounds = array<i64: 16, 32>}]} {
    %c0 = arith.constant 0 : index
    %c0_0 = arith.constant 0 : index
    %0 = vector.load %arg1[%c0, %c0_0] : memref<16x32xf32, #tpu.memory_space<vmem>>, vector<16x32xf32>
    %cst = arith.constant dense<0.000000e+00> : vector<16xf32>
    %1 = vector.multi_reduction <add>, %0, %cst [1] : vector<16x32xf32> to vector<16xf32>
    %2 = vector.shape_cast %1 : vector<16xf32> to vector<16x1xf32>
    %cst_1 = arith.constant 3.200000e+01 : f32
    %3 = vector.broadcast %cst_1 : f32 to vector<16x1xf32>
    %4 = arith.divf %2, %3 : vector<16x1xf32>
    %5 = vector.broadcast %4 : vector<16x1xf32> to vector<16x32xf32>
    %6 = arith.subf %0, %5 : vector<16x32xf32>
    %7 = arith.mulf %6, %6 : vector<16x32xf32>
    %cst_2 = arith.constant dense<0.000000e+00> : vector<16xf32>
    %8 = vector.multi_reduction <add>, %7, %cst_2 [1] : vector<16x32xf32> to vector<16xf32>
    %9 = vector.shape_cast %8 : vector<16xf32> to vector<16x1xf32>
    %cst_3 = arith.constant 3.200000e+01 : f32
    %10 = vector.broadcast %cst_3 : f32 to vector<16x1xf32>
    %11 = arith.divf %9, %10 : vector<16x1xf32>
    %12 = vector.broadcast %4 : vector<16x1xf32> to vector<16x32xf32>
    %13 = arith.subf %0, %12 : vector<16x32xf32>
    %cst_4 = arith.constant 9.99999974E-6 : f32
    %14 = vector.broadcast %cst_4 : f32 to vector<16x1xf32>
    %15 = arith.addf %11, %14 : vector<16x1xf32>
    %16 = math.rsqrt %15 : vector<16x1xf32>
    %17 = vector.broadcast %16 : vector<16x1xf32> to vector<16x32xf32>
    %18 = arith.mulf %13, %17 : vector<16x32xf32>
    %c0_5 = arith.constant 0 : index
    %c0_6 = arith.constant 0 : index
    %19 = vector.load %arg2[%c0_5, %c0_6] : memref<1x32xf32, #tpu.memory_space<vmem>>, vector<1x32xf32>
    %20 = vector.broadcast %19 : vector<1x32xf32> to vector<16x32xf32>
    %21 = arith.mulf %18, %20 : vector<16x32xf32>
    %c0_7 = arith.constant 0 : index
    %c0_8 = arith.constant 0 : index
    %22 = vector.load %arg3[%c0_7, %c0_8] : memref<1x32xf32, #tpu.memory_space<vmem>>, vector<1x32xf32>
    %23 = vector.broadcast %22 : vector<1x32xf32> to vector<16x32xf32>
    %24 = arith.addf %21, %23 : vector<16x32xf32>
    %c0_9 = arith.constant 0 : index
    %c0_10 = arith.constant 0 : index
    %25 = vector.load %arg4[%c0_9, %c0_10] : memref<16x32xf32, #tpu.memory_space<vmem>>, vector<16x32xf32>
    tpu.vector_store %arg4[%c0_9, %c0_10], %24 {strides = array<i32>} : memref<16x32xf32, #tpu.memory_space<vmem>>, vector<16x32xf32>,
    return
  }
  func.func @transform_0(%arg0: i32) -> (i32, i32) {
    %c0_i32 = arith.constant 0 : i32
    %c0_i32_0 = arith.constant 0 : i32
    return %arg0, %c0_i32 : i32, i32
  }
  func.func @transform_1(%arg0: i32) -> (i32, i32) {
    %c0_i32 = arith.constant 0 : i32
    %c0_i32_0 = arith.constant 0 : i32
    %c0_i32_1 = arith.constant 0 : i32
    return %c0_i32, %c0_i32_0 : i32, i32
  }
  func.func @transform_2(%arg0: i32) -> (i32, i32) {
    %c0_i32 = arith.constant 0 : i32
    %c0_i32_0 = arith.constant 0 : i32
    %c0_i32_1 = arith.constant 0 : i32
    return %c0_i32, %c0_i32_0 : i32, i32
  }
  func.func @transform_3(%arg0: i32) -> (i32, i32) {
    %c0_i32 = arith.constant 0 : i32
    %c0_i32_0 = arith.constant 0 : i32
    return %arg0, %c0_i32 : i32, i32
  }
}

module attributes {stable_mosaic.version = 11 : i64} {
  func.func @_linear_kernel(%arg0: i32, %arg1: i32, %arg2: i32, %arg3: memref<16x64xf32, #tpu.memory_space<vmem>>, %arg4: memref<64x32xbf16, #tpu.memory_space<vmem>>, %arg5: memref<1x32xf32, #tpu.memory_space<vmem>>, %arg6: memref<16x32xf32, #tpu.memory_space<vmem>>, %arg7: memref<16x32xf32, #tpu.memory_space<vmem>>, %arg8: memref<16x32xf32, #tpu.memory_space<vmem>>) attributes {dimension_semantics = [#tpu.dimension_semantics<parallel>, #tpu.dimension_semantics<parallel>, #tpu.dimension_semantics<arbitrary>], iteration_bounds = array<i64: 1, 1, 1>, scalar_prefetch = 0 : i64, scratch_operands = 1 : i64, tpu.core_type = #tpu.core_type<tc>, window_params = [{transform_indices = @transform_0, window_bounds = array<i64: 16, 64>}, {transform_indices = @transform_1, window_bounds = array<i64: 64, 32>}, {transform_indices = @transform_2, window_bounds = array<i64: 1, 32>}, {transform_indices = @transform_3, window_bounds = array<i64: 16, 32>}, {transform_indices = @transform_4, window_bounds = array<i64: 16, 32>}]} {
    %c0_i32 = arith.constant 0 : i32
    %0 = arith.cmpi eq, %arg2, %c0_i32 : i32
    %1 = arith.extui %0 : i1 to i32
    %c0_i32_0 = arith.constant 0 : i32
    %2 = arith.cmpi ne, %1, %c0_i32_0 : i32
    scf.if %2 {
      %cst_10 = arith.constant 0.000000e+00 : f32
      %13 = vector.broadcast %cst_10 : f32 to vector<16x32xf32>
      %c0_11 = arith.constant 0 : index
      %c0_12 = arith.constant 0 : index
      %14 = vector.load %arg8[%c0_11, %c0_12] : memref<16x32xf32, #tpu.memory_space<vmem>>, vector<16x32xf32>
      tpu.vector_store %arg8[%c0_11, %c0_12], %13 {strides = array<i32>} : memref<16x32xf32, #tpu.memory_space<vmem>>, vector<16x32xf32>,
    } else {
    }
    %c0 = arith.constant 0 : index
    %c0_1 = arith.constant 0 : index
    %3 = vector.load %arg3[%c0, %c0_1] : memref<16x64xf32, #tpu.memory_space<vmem>>, vector<16x64xf32>
    %c0_2 = arith.constant 0 : index
    %c0_3 = arith.constant 0 : index
    %4 = vector.load %arg8[%c0_2, %c0_3] : memref<16x32xf32, #tpu.memory_space<vmem>>, vector<16x32xf32>
    %5 = arith.truncf %3 : vector<16x64xf32> to vector<16x64xbf16>
    %c0_4 = arith.constant 0 : index
    %c0_5 = arith.constant 0 : index
    %6 = vector.load %arg4[%c0_4, %c0_5] : memref<64x32xbf16, #tpu.memory_space<vmem>>, vector<64x32xbf16>
    %cst = arith.constant dense<0.000000e+00> : vector<16x32xf32>
    %7 = tpu.matmul %5, %6, %cst {dimension_numbers = #tpu.dot_dimension_numbers<[1], [0], [0], [1], [0, 0, 1, 1], [], []>} : vector<16x64xbf16>, vector<64x32xbf16>, vector<16x32xf32> -> vector<16x32xf32>
    %8 = arith.addf %4, %7 : vector<16x32xf32>
    %c0_6 = arith.constant 0 : index
    %c0_7 = arith.constant 0 : index
    %9 = vector.load %arg8[%c0_6, %c0_7] : memref<16x32xf32, #tpu.memory_space<vmem>>, vector<16x32xf32>
    tpu.vector_store %arg8[%c0_6, %c0_7], %8 {strides = array<i32>} : memref<16x32xf32, #tpu.memory_space<vmem>>, vector<16x32xf32>,
    %c0_i32_8 = arith.constant 0 : i32
    %10 = arith.cmpi eq, %arg2, %c0_i32_8 : i32
    %11 = arith.extui %10 : i1 to i32
    %c0_i32_9 = arith.constant 0 : i32
    %12 = arith.cmpi ne, %11, %c0_i32_9 : i32
    scf.if %12 {
      %c0_10 = arith.constant 0 : index
      %c0_11 = arith.constant 0 : index
      %13 = vector.load %arg8[%c0_10, %c0_11] : memref<16x32xf32, #tpu.memory_space<vmem>>, vector<16x32xf32>
      %c0_12 = arith.constant 0 : index
      %c0_13 = arith.constant 0 : index
      %14 = vector.load %arg5[%c0_12, %c0_13] : memref<1x32xf32, #tpu.memory_space<vmem>>, vector<1x32xf32>
      %15 = vector.broadcast %14 : vector<1x32xf32> to vector<16x32xf32>
      %16 = arith.addf %13, %15 : vector<16x32xf32>
      %c0_14 = arith.constant 0 : index
      %c0_15 = arith.constant 0 : index
      %17 = vector.load %arg6[%c0_14, %c0_15] : memref<16x32xf32, #tpu.memory_space<vmem>>, vector<16x32xf32>
      %18 = arith.addf %16, %17 : vector<16x32xf32>
      %c0_16 = arith.constant 0 : index
      %c0_17 = arith.constant 0 : index
      %19 = vector.load %arg7[%c0_16, %c0_17] : memref<16x32xf32, #tpu.memory_space<vmem>>, vector<16x32xf32>
      tpu.vector_store %arg7[%c0_16, %c0_17], %18 {strides = array<i32>} : memref<16x32xf32, #tpu.memory_space<vmem>>, vector<16x32xf32>,
    } else {
    }
    return
  }
  func.func @transform_0(%arg0: i32, %arg1: i32, %arg2: i32) -> (i32, i32) {
    %c0_i32 = arith.constant 0 : i32
    return %arg0, %arg2 : i32, i32
  }
  func.func @transform_1(%arg0: i32, %arg1: i32, %arg2: i32) -> (i32, i32) {
    %c0_i32 = arith.constant 0 : i32
    return %arg2, %arg1 : i32, i32
  }
  func.func @transform_2(%arg0: i32, %arg1: i32, %arg2: i32) -> (i32, i32) {
    %c0_i32 = arith.constant 0 : i32
    %c0_i32_0 = arith.constant 0 : i32
    return %c0_i32, %arg1 : i32, i32
  }
  func.func @transform_3(%arg0: i32, %arg1: i32, %arg2: i32) -> (i32, i32) {
    %c0_i32 = arith.constant 0 : i32
    return %arg0, %arg1 : i32, i32
  }
  func.func @transform_4(%arg0: i32, %arg1: i32, %arg2: i32) -> (i32, i32) {
    %c0_i32 = arith.constant 0 : i32
    return %arg0, %arg1 : i32, i32
  }
}

module attributes {stable_mosaic.version = 11 : i64} {
  func.func @_flash_attn_kernel(%arg0: i32, %arg1: i32, %arg2: i32, %arg3: i32, %arg4: memref<1x1x8x8xbf16, #tpu.memory_space<vmem>>, %arg5: memref<1x1x8x8xbf16, #tpu.memory_space<vmem>>, %arg6: memref<1x1x8x8xbf16, #tpu.memory_space<vmem>>, %arg7: memref<1x1x8xf32, #tpu.memory_space<vmem>>, %arg8: memref<1x1x8x8xbf16, #tpu.memory_space<vmem>>, %arg9: memref<8x1xf32, #tpu.memory_space<vmem>>, %arg10: memref<8x1xf32, #tpu.memory_space<vmem>>, %arg11: memref<8x8xf32, #tpu.memory_space<vmem>>) attributes {dimension_semantics = [#tpu.dimension_semantics<parallel>, #tpu.dimension_semantics<parallel>, #tpu.dimension_semantics<parallel>, #tpu.dimension_semantics<arbitrary>], iteration_bounds = array<i64: 2, 4, 1, 1>, scalar_prefetch = 0 : i64, scratch_operands = 3 : i64, tpu.core_type = #tpu.core_type<tc>, window_params = [{transform_indices = @transform_0, window_bounds = array<i64: 1, 1, 8, 8>}, {transform_indices = @transform_1, window_bounds = array<i64: 1, 1, 8, 8>}, {transform_indices = @transform_2, window_bounds = array<i64: 1, 1, 8, 8>}, {transform_indices = @transform_3, window_bounds = array<i64: 1, 1, 8>}, {transform_indices = @transform_4, window_bounds = array<i64: 1, 1, 8, 8>}]} {
    %c0_i32 = arith.constant 0 : i32
    %0 = arith.cmpi eq, %arg3, %c0_i32 : i32
    %1 = arith.extui %0 : i1 to i32
    %c0_i32_0 = arith.constant 0 : i32
    %2 = arith.cmpi ne, %1, %c0_i32_0 : i32
    scf.if %2 {
      %cst_35 = arith.constant 0xFF800000 : f32
      %46 = vector.broadcast %cst_35 : f32 to vector<8x1xf32>
      %c0_36 = arith.constant 0 : index
      %c0_37 = arith.constant 0 : index
      %47 = vector.load %arg9[%c0_36, %c0_37] : memref<8x1xf32, #tpu.memory_space<vmem>>, vector<8x1xf32>
      tpu.vector_store %arg9[%c0_36, %c0_37], %46 {strides = array<i32>} : memref<8x1xf32, #tpu.memory_space<vmem>>, vector<8x1xf32>,
      %cst_38 = arith.constant 0.000000e+00 : f32
      %48 = vector.broadcast %cst_38 : f32 to vector<8x1xf32>
      %c0_39 = arith.constant 0 : index
      %c0_40 = arith.constant 0 : index
      %49 = vector.load %arg10[%c0_39, %c0_40] : memref<8x1xf32, #tpu.memory_space<vmem>>, vector<8x1xf32>
      tpu.vector_store %arg10[%c0_39, %c0_40], %48 {strides = array<i32>} : memref<8x1xf32, #tpu.memory_space<vmem>>, vector<8x1xf32>,
      %cst_41 = arith.constant 0.000000e+00 : f32
      %50 = vector.broadcast %cst_41 : f32 to vector<8x8xf32>
      %c0_42 = arith.constant 0 : index
      %c0_43 = arith.constant 0 : index
      %51 = vector.load %arg11[%c0_42, %c0_43] : memref<8x8xf32, #tpu.memory_space<vmem>>, vector<8x8xf32>
      tpu.vector_store %arg11[%c0_42, %c0_43], %50 {strides = array<i32>} : memref<8x8xf32, #tpu.memory_space<vmem>>, vector<8x8xf32>,
    } else {
    }
    %c0 = arith.constant 0 : index
    %c0_1 = arith.constant 0 : index
    %c0_2 = arith.constant 0 : index
    %c0_3 = arith.constant 0 : index
    %3 = vector.load %arg4[%c0, %c0_1, %c0_2, %c0_3] : memref<1x1x8x8xbf16, #tpu.memory_space<vmem>>, vector<1x1x8x8xbf16>
    %4 = vector.shape_cast %3 : vector<1x1x8x8xbf16> to vector<8x8xbf16>
    %c0_4 = arith.constant 0 : index
    %c0_5 = arith.constant 0 : index
    %c0_6 = arith.constant 0 : index
    %c0_7 = arith.constant 0 : index
    %5 = vector.load %arg5[%c0_4, %c0_5, %c0_6, %c0_7] : memref<1x1x8x8xbf16, #tpu.memory_space<vmem>>, vector<1x1x8x8xbf16>
    %6 = vector.shape_cast %5 : vector<1x1x8x8xbf16> to vector<8x8xbf16>
    %cst = arith.constant dense<0.000000e+00> : vector<8x8xf32>
    %7 = tpu.matmul %4, %6, %cst {dimension_numbers = #tpu.dot_dimension_numbers<[1], [1], [0], [0], [0, 0, 1, 0], [], []>} : vector<8x8xbf16>, vector<8x8xbf16>, vector<8x8xf32> -> vector<8x8xf32>
    %cst_8 = arith.constant 0.353553385 : f32
    %8 = vector.broadcast %cst_8 : f32 to vector<8x8xf32>
    %9 = arith.mulf %7, %8 : vector<8x8xf32>
    %c0_9 = arith.constant 0 : index
    %c0_10 = arith.constant 0 : index
    %c0_11 = arith.constant 0 : index
    %10 = vector.load %arg7[%c0_9, %c0_10, %c0_11] : memref<1x1x8xf32, #tpu.memory_space<vmem>>, vector<1x1x8xf32>
    %11 = vector.shape_cast %10 : vector<1x1x8xf32> to vector<1x8xf32>
    %cst_12 = arith.constant 1.000000e+00 : f32
    %12 = vector.broadcast %cst_12 : f32 to vector<1x8xf32>
    %13 = arith.subf %12, %11 : vector<1x8xf32>
    %cst_13 = arith.constant -1.000000e+09 : f32
    %14 = vector.broadcast %cst_13 : f32 to vector<1x8xf32>
    %15 = arith.mulf %13, %14 : vector<1x8xf32>
    %16 = vector.broadcast %15 : vector<1x8xf32> to vector<8x8xf32>
    %17 = arith.addf %9, %16 : vector<8x8xf32>
    %c0_14 = arith.constant 0 : index
    %c0_15 = arith.constant 0 : index
    %18 = vector.load %arg9[%c0_14, %c0_15] : memref<8x1xf32, #tpu.memory_space<vmem>>, vector<8x1xf32>
    %cst_16 = arith.constant dense<0xFF800000> : vector<8xf32>
    %19 = vector.multi_reduction <maximumf>, %17, %cst_16 [1] : vector<8x8xf32> to vector<8xf32>
    %20 = vector.shape_cast %19 : vector<8xf32> to vector<8x1xf32>
    %21 = arith.maximumf %18, %20 : vector<8x1xf32>
    %22 = arith.subf %18, %21 : vector<8x1xf32>
    %23 = math.exp %22 : vector<8x1xf32>
    %24 = vector.broadcast %21 : vector<8x1xf32> to vector<8x8xf32>
    %25 = arith.subf %17, %24 : vector<8x8xf32>
    %26 = math.exp %25 : vector<8x8xf32>
    %c0_17 = arith.constant 0 : index
    %c0_18 = arith.constant 0 : index
    %27 = vector.load %arg10[%c0_17, %c0_18] : memref<8x1xf32, #tpu.memory_space<vmem>>, vector<8x1xf32>
    %28 = arith.mulf %23, %27 : vector<8x1xf32>
    %cst_19 = arith.constant dense<0.000000e+00> : vector<8xf32>
    %29 = vector.multi_reduction <add>, %26, %cst_19 [1] : vector<8x8xf32> to vector<8xf32>
    %30 = vector.shape_cast %29 : vector<8xf32> to vector<8x1xf32>
    %31 = arith.addf %28, %30 : vector<8x1xf32>
    %c0_20 = arith.constant 0 : index
    %c0_21 = arith.constant 0 : index
    %32 = vector.load %arg10[%c0_20, %c0_21] : memref<8x1xf32, #tpu.memory_space<vmem>>, vector<8x1xf32>
    tpu.vector_store %arg10[%c0_20, %c0_21], %31 {strides = array<i32>} : memref<8x1xf32, #tpu.memory_space<vmem>>, vector<8x1xf32>,
    %c0_22 = arith.constant 0 : index
    %c0_23 = arith.constant 0 : index
    %33 = vector.load %arg11[%c0_22, %c0_23] : memref<8x8xf32, #tpu.memory_space<vmem>>, vector<8x8xf32>
    %34 = vector.broadcast %23 : vector<8x1xf32> to vector<8x8xf32>
    %35 = arith.mulf %34, %33 : vector<8x8xf32>
    %36 = arith.truncf %26 : vector<8x8xf32> to vector<8x8xbf16>
    %c0_24 = arith.constant 0 : index
    %c0_25 = arith.constant 0 : index
    %c0_26 = arith.constant 0 : index
    %c0_27 = arith.constant 0 : index
    %37 = vector.load %arg6[%c0_24, %c0_25, %c0_26, %c0_27] : memref<1x1x8x8xbf16, #tpu.memory_space<vmem>>, vector<1x1x8x8xbf16>
    %38 = vector.shape_cast %37 : vector<1x1x8x8xbf16> to vector<8x8xbf16>
    %cst_28 = arith.constant dense<0.000000e+00> : vector<8x8xf32>
    %39 = tpu.matmul %36, %38, %cst_28 {dimension_numbers = #tpu.dot_dimension_numbers<[1], [0], [0], [1], [0, 0, 1, 1], [], []>} : vector<8x8xbf16>, vector<8x8xbf16>, vector<8x8xf32> -> vector<8x8xf32>
    %40 = arith.addf %35, %39 : vector<8x8xf32>
    %c0_29 = arith.constant 0 : index
    %c0_30 = arith.constant 0 : index
    %41 = vector.load %arg11[%c0_29, %c0_30] : memref<8x8xf32, #tpu.memory_space<vmem>>, vector<8x8xf32>
    tpu.vector_store %arg11[%c0_29, %c0_30], %40 {strides = array<i32>} : memref<8x8xf32, #tpu.memory_space<vmem>>, vector<8x8xf32>,
    %c0_31 = arith.constant 0 : index
    %c0_32 = arith.constant 0 : index
    %42 = vector.load %arg9[%c0_31, %c0_32] : memref<8x1xf32, #tpu.memory_space<vmem>>, vector<8x1xf32>
    tpu.vector_store %arg9[%c0_31, %c0_32], %21 {strides = array<i32>} : memref<8x1xf32, #tpu.memory_space<vmem>>, vector<8x1xf32>,
    %c0_i32_33 = arith.constant 0 : i32
    %43 = arith.cmpi eq, %arg3, %c0_i32_33 : i32
    %44 = arith.extui %43 : i1 to i32
    %c0_i32_34 = arith.constant 0 : i32
    %45 = arith.cmpi ne, %44, %c0_i32_34 : i32
    scf.if %45 {
      %c0_35 = arith.constant 0 : index
      %c0_36 = arith.constant 0 : index
      %46 = vector.load %arg11[%c0_35, %c0_36] : memref<8x8xf32, #tpu.memory_space<vmem>>, vector<8x8xf32>
      %c0_37 = arith.constant 0 : index
      %c0_38 = arith.constant 0 : index
      %47 = vector.load %arg10[%c0_37, %c0_38] : memref<8x1xf32, #tpu.memory_space<vmem>>, vector<8x1xf32>
      %48 = vector.broadcast %47 : vector<8x1xf32> to vector<8x8xf32>
      %49 = arith.divf %46, %48 : vector<8x8xf32>
      %50 = arith.truncf %49 : vector<8x8xf32> to vector<8x8xbf16>
      %c0_39 = arith.constant 0 : index
      %c0_40 = arith.constant 0 : index
      %c0_41 = arith.constant 0 : index
      %c0_42 = arith.constant 0 : index
      %51 = vector.load %arg8[%c0_39, %c0_40, %c0_41, %c0_42] : memref<1x1x8x8xbf16, #tpu.memory_space<vmem>>, vector<1x1x8x8xbf16>
      %52 = vector.shape_cast %51 : vector<1x1x8x8xbf16> to vector<8x8xbf16>
      %53 = vector.shape_cast %50 : vector<8x8xbf16> to vector<1x1x8x8xbf16>
      tpu.vector_store %arg8[%c0_39, %c0_40, %c0_41, %c0_42], %53 {strides = array<i32>} : memref<1x1x8x8xbf16, #tpu.memory_space<vmem>>, vector<1x1x8x8xbf16>,
    } else {
    }
    return
  }
  func.func @transform_0(%arg0: i32, %arg1: i32, %arg2: i32, %arg3: i32) -> (i32, i32, i32, i32) {
    %c0_i32 = arith.constant 0 : i32
    %c0_i32_0 = arith.constant 0 : i32
    return %arg0, %arg1, %arg2, %c0_i32 : i32, i32, i32, i32
  }
  func.func @transform_1(%arg0: i32, %arg1: i32, %arg2: i32, %arg3: i32) -> (i32, i32, i32, i32) {
    %c0_i32 = arith.constant 0 : i32
    %c0_i32_0 = arith.constant 0 : i32
    return %arg0, %arg1, %arg3, %c0_i32 : i32, i32, i32, i32
  }
  func.func @transform_2(%arg0: i32, %arg1: i32, %arg2: i32, %arg3: i32) -> (i32, i32, i32, i32) {
    %c0_i32 = arith.constant 0 : i32
    %c0_i32_0 = arith.constant 0 : i32
    return %arg0, %arg1, %arg3, %c0_i32 : i32, i32, i32, i32
  }
  func.func @transform_3(%arg0: i32, %arg1: i32, %arg2: i32, %arg3: i32) -> (i32, i32, i32) {
    %c0_i32 = arith.constant 0 : i32
    %c0_i32_0 = arith.constant 0 : i32
    return %arg0, %c0_i32, %arg3 : i32, i32, i32
  }
  func.func @transform_4(%arg0: i32, %arg1: i32, %arg2: i32, %arg3: i32) -> (i32, i32, i32, i32) {
    %c0_i32 = arith.constant 0 : i32
    %c0_i32_0 = arith.constant 0 : i32
    return %arg0, %arg1, %arg2, %c0_i32 : i32, i32, i32, i32
  }
}

module attributes {stable_mosaic.version = 11 : i64} {
  func.func @_linear_kernel(%arg0: i32, %arg1: i32, %arg2: i32, %arg3: memref<16x32xf32, #tpu.memory_space<vmem>>, %arg4: memref<32x64xbf16, #tpu.memory_space<vmem>>, %arg5: memref<1x64xf32, #tpu.memory_space<vmem>>, %arg6: memref<16x64xbf16, #tpu.memory_space<vmem>>, %arg7: memref<16x64xf32, #tpu.memory_space<vmem>>) attributes {dimension_semantics = [#tpu.dimension_semantics<parallel>, #tpu.dimension_semantics<parallel>, #tpu.dimension_semantics<arbitrary>], iteration_bounds = array<i64: 1, 1, 1>, scalar_prefetch = 0 : i64, scratch_operands = 1 : i64, tpu.core_type = #tpu.core_type<tc>, window_params = [{transform_indices = @transform_0, window_bounds = array<i64: 16, 32>}, {transform_indices = @transform_1, window_bounds = array<i64: 32, 64>}, {transform_indices = @transform_2, window_bounds = array<i64: 1, 64>}, {transform_indices = @transform_3, window_bounds = array<i64: 16, 64>}]} {
    %c0_i32 = arith.constant 0 : i32
    %0 = arith.cmpi eq, %arg2, %c0_i32 : i32
    %1 = arith.extui %0 : i1 to i32
    %c0_i32_0 = arith.constant 0 : i32
    %2 = arith.cmpi ne, %1, %c0_i32_0 : i32
    scf.if %2 {
      %cst_10 = arith.constant 0.000000e+00 : f32
      %13 = vector.broadcast %cst_10 : f32 to vector<16x64xf32>
      %c0_11 = arith.constant 0 : index
      %c0_12 = arith.constant 0 : index
      %14 = vector.load %arg7[%c0_11, %c0_12] : memref<16x64xf32, #tpu.memory_space<vmem>>, vector<16x64xf32>
      tpu.vector_store %arg7[%c0_11, %c0_12], %13 {strides = array<i32>} : memref<16x64xf32, #tpu.memory_space<vmem>>, vector<16x64xf32>,
    } else {
    }
    %c0 = arith.constant 0 : index
    %c0_1 = arith.constant 0 : index
    %3 = vector.load %arg3[%c0, %c0_1] : memref<16x32xf32, #tpu.memory_space<vmem>>, vector<16x32xf32>
    %c0_2 = arith.constant 0 : index
    %c0_3 = arith.constant 0 : index
    %4 = vector.load %arg7[%c0_2, %c0_3] : memref<16x64xf32, #tpu.memory_space<vmem>>, vector<16x64xf32>
    %5 = arith.truncf %3 : vector<16x32xf32> to vector<16x32xbf16>
    %c0_4 = arith.constant 0 : index
    %c0_5 = arith.constant 0 : index
    %6 = vector.load %arg4[%c0_4, %c0_5] : memref<32x64xbf16, #tpu.memory_space<vmem>>, vector<32x64xbf16>
    %cst = arith.constant dense<0.000000e+00> : vector<16x64xf32>
    %7 = tpu.matmul %5, %6, %cst {dimension_numbers = #tpu.dot_dimension_numbers<[1], [0], [0], [1], [0, 0, 1, 1], [], []>} : vector<16x32xbf16>, vector<32x64xbf16>, vector<16x64xf32> -> vector<16x64xf32>
    %8 = arith.addf %4, %7 : vector<16x64xf32>
    %c0_6 = arith.constant 0 : index
    %c0_7 = arith.constant 0 : index
    %9 = vector.load %arg7[%c0_6, %c0_7] : memref<16x64xf32, #tpu.memory_space<vmem>>, vector<16x64xf32>
    tpu.vector_store %arg7[%c0_6, %c0_7], %8 {strides = array<i32>} : memref<16x64xf32, #tpu.memory_space<vmem>>, vector<16x64xf32>,
    %c0_i32_8 = arith.constant 0 : i32
    %10 = arith.cmpi eq, %arg2, %c0_i32_8 : i32
    %11 = arith.extui %10 : i1 to i32
    %c0_i32_9 = arith.constant 0 : i32
    %12 = arith.cmpi ne, %11, %c0_i32_9 : i32
    scf.if %12 {
      %c0_10 = arith.constant 0 : index
      %c0_11 = arith.constant 0 : index
      %13 = vector.load %arg7[%c0_10, %c0_11] : memref<16x64xf32, #tpu.memory_space<vmem>>, vector<16x64xf32>
      %c0_12 = arith.constant 0 : index
      %c0_13 = arith.constant 0 : index
      %14 = vector.load %arg5[%c0_12, %c0_13] : memref<1x64xf32, #tpu.memory_space<vmem>>, vector<1x64xf32>
      %15 = vector.broadcast %14 : vector<1x64xf32> to vector<16x64xf32>
      %16 = arith.addf %13, %15 : vector<16x64xf32>
      %17 = arith.truncf %16 : vector<16x64xf32> to vector<16x64xbf16>
      %c0_14 = arith.constant 0 : index
      %c0_15 = arith.constant 0 : index
      %18 = vector.load %arg6[%c0_14, %c0_15] : memref<16x64xbf16, #tpu.memory_space<vmem>>, vector<16x64xbf16>
      tpu.vector_store %arg6[%c0_14, %c0_15], %17 {strides = array<i32>} : memref<16x64xbf16, #tpu.memory_space<vmem>>, vector<16x64xbf16>,
    } else {
    }
    return
  }
  func.func @transform_0(%arg0: i32, %arg1: i32, %arg2: i32) -> (i32, i32) {
    %c0_i32 = arith.constant 0 : i32
    return %arg0, %arg2 : i32, i32
  }
  func.func @transform_1(%arg0: i32, %arg1: i32, %arg2: i32) -> (i32, i32) {
    %c0_i32 = arith.constant 0 : i32
    return %arg2, %arg1 : i32, i32
  }
  func.func @transform_2(%arg0: i32, %arg1: i32, %arg2: i32) -> (i32, i32) {
    %c0_i32 = arith.constant 0 : i32
    %c0_i32_0 = arith.constant 0 : i32
    return %c0_i32, %arg1 : i32, i32
  }
  func.func @transform_3(%arg0: i32, %arg1: i32, %arg2: i32) -> (i32, i32) {
    %c0_i32 = arith.constant 0 : i32
    return %arg0, %arg1 : i32, i32
  }
}

module attributes {stable_mosaic.version = 11 : i64} {
  func.func @_linear_kernel(%arg0: i32, %arg1: i32, %arg2: i32, %arg3: memref<16x32xf32, #tpu.memory_space<vmem>>, %arg4: memref<32x64xbf16, #tpu.memory_space<vmem>>, %arg5: memref<1x64xf32, #tpu.memory_space<vmem>>, %arg6: memref<1x32xf32, #tpu.memory_space<vmem>>, %arg7: memref<1x32xf32, #tpu.memory_space<vmem>>, %arg8: memref<16x64xf32, #tpu.memory_space<vmem>>, %arg9: memref<16x64xf32, #tpu.memory_space<vmem>>) attributes {dimension_semantics = [#tpu.dimension_semantics<parallel>, #tpu.dimension_semantics<parallel>, #tpu.dimension_semantics<arbitrary>], iteration_bounds = array<i64: 1, 1, 1>, scalar_prefetch = 0 : i64, scratch_operands = 1 : i64, tpu.core_type = #tpu.core_type<tc>, window_params = [{transform_indices = @transform_0, window_bounds = array<i64: 16, 32>}, {transform_indices = @transform_1, window_bounds = array<i64: 32, 64>}, {transform_indices = @transform_2, window_bounds = array<i64: 1, 64>}, {transform_indices = @transform_3, window_bounds = array<i64: 1, 32>}, {transform_indices = @transform_4, window_bounds = array<i64: 1, 32>}, {transform_indices = @transform_5, window_bounds = array<i64: 16, 64>}]} {
    %c0_i32 = arith.constant 0 : i32
    %0 = arith.cmpi eq, %arg2, %c0_i32 : i32
    %1 = arith.extui %0 : i1 to i32
    %c0_i32_0 = arith.constant 0 : i32
    %2 = arith.cmpi ne, %1, %c0_i32_0 : i32
    scf.if %2 {
      %cst_19 = arith.constant 0.000000e+00 : f32
      %37 = vector.broadcast %cst_19 : f32 to vector<16x64xf32>
      %c0_20 = arith.constant 0 : index
      %c0_21 = arith.constant 0 : index
      %38 = vector.load %arg9[%c0_20, %c0_21] : memref<16x64xf32, #tpu.memory_space<vmem>>, vector<16x64xf32>
      tpu.vector_store %arg9[%c0_20, %c0_21], %37 {strides = array<i32>} : memref<16x64xf32, #tpu.memory_space<vmem>>, vector<16x64xf32>,
    } else {
    }
    %c0 = arith.constant 0 : index
    %c0_1 = arith.constant 0 : index
    %3 = vector.load %arg3[%c0, %c0_1] : memref<16x32xf32, #tpu.memory_space<vmem>>, vector<16x32xf32>
    %cst = arith.constant dense<0.000000e+00> : vector<16xf32>
    %4 = vector.multi_reduction <add>, %3, %cst [1] : vector<16x32xf32> to vector<16xf32>
    %5 = vector.shape_cast %4 : vector<16xf32> to vector<16x1xf32>
    %cst_2 = arith.constant 3.200000e+01 : f32
    %6 = vector.broadcast %cst_2 : f32 to vector<16x1xf32>
    %7 = arith.divf %5, %6 : vector<16x1xf32>
    %8 = vector.broadcast %7 : vector<16x1xf32> to vector<16x32xf32>
    %9 = arith.subf %3, %8 : vector<16x32xf32>
    %10 = arith.mulf %9, %9 : vector<16x32xf32>
    %cst_3 = arith.constant dense<0.000000e+00> : vector<16xf32>
    %11 = vector.multi_reduction <add>, %10, %cst_3 [1] : vector<16x32xf32> to vector<16xf32>
    %12 = vector.shape_cast %11 : vector<16xf32> to vector<16x1xf32>
    %cst_4 = arith.constant 3.200000e+01 : f32
    %13 = vector.broadcast %cst_4 : f32 to vector<16x1xf32>
    %14 = arith.divf %12, %13 : vector<16x1xf32>
    %15 = vector.broadcast %7 : vector<16x1xf32> to vector<16x32xf32>
    %16 = arith.subf %3, %15 : vector<16x32xf32>
    %cst_5 = arith.constant 9.99999974E-6 : f32
    %17 = vector.broadcast %cst_5 : f32 to vector<16x1xf32>
    %18 = arith.addf %14, %17 : vector<16x1xf32>
    %19 = math.rsqrt %18 : vector<16x1xf32>
    %20 = vector.broadcast %19 : vector<16x1xf32> to vector<16x32xf32>
    %21 = arith.mulf %16, %20 : vector<16x32xf32>
    %c0_6 = arith.constant 0 : index
    %c0_7 = arith.constant 0 : index
    %22 = vector.load %arg6[%c0_6, %c0_7] : memref<1x32xf32, #tpu.memory_space<vmem>>, vector<1x32xf32>
    %23 = vector.broadcast %22 : vector<1x32xf32> to vector<16x32xf32>
    %24 = arith.mulf %21, %23 : vector<16x32xf32>
    %c0_8 = arith.constant 0 : index
    %c0_9 = arith.constant 0 : index
    %25 = vector.load %arg7[%c0_8, %c0_9] : memref<1x32xf32, #tpu.memory_space<vmem>>, vector<1x32xf32>
    %26 = vector.broadcast %25 : vector<1x32xf32> to vector<16x32xf32>
    %27 = arith.addf %24, %26 : vector<16x32xf32>
    %c0_10 = arith.constant 0 : index
    %c0_11 = arith.constant 0 : index
    %28 = vector.load %arg9[%c0_10, %c0_11] : memref<16x64xf32, #tpu.memory_space<vmem>>, vector<16x64xf32>
    %29 = arith.truncf %27 : vector<16x32xf32> to vector<16x32xbf16>
    %c0_12 = arith.constant 0 : index
    %c0_13 = arith.constant 0 : index
    %30 = vector.load %arg4[%c0_12, %c0_13] : memref<32x64xbf16, #tpu.memory_space<vmem>>, vector<32x64xbf16>
    %cst_14 = arith.constant dense<0.000000e+00> : vector<16x64xf32>
    %31 = tpu.matmul %29, %30, %cst_14 {dimension_numbers = #tpu.dot_dimension_numbers<[1], [0], [0], [1], [0, 0, 1, 1], [], []>} : vector<16x32xbf16>, vector<32x64xbf16>, vector<16x64xf32> -> vector<16x64xf32>
    %32 = arith.addf %28, %31 : vector<16x64xf32>
    %c0_15 = arith.constant 0 : index
    %c0_16 = arith.constant 0 : index
    %33 = vector.load %arg9[%c0_15, %c0_16] : memref<16x64xf32, #tpu.memory_space<vmem>>, vector<16x64xf32>
    tpu.vector_store %arg9[%c0_15, %c0_16], %32 {strides = array<i32>} : memref<16x64xf32, #tpu.memory_space<vmem>>, vector<16x64xf32>,
    %c0_i32_17 = arith.constant 0 : i32
    %34 = arith.cmpi eq, %arg2, %c0_i32_17 : i32
    %35 = arith.extui %34 : i1 to i32
    %c0_i32_18 = arith.constant 0 : i32
    %36 = arith.cmpi ne, %35, %c0_i32_18 : i32
    scf.if %36 {
      %c0_19 = arith.constant 0 : index
      %c0_20 = arith.constant 0 : index
      %37 = vector.load %arg9[%c0_19, %c0_20] : memref<16x64xf32, #tpu.memory_space<vmem>>, vector<16x64xf32>
      %c0_21 = arith.constant 0 : index
      %c0_22 = arith.constant 0 : index
      %38 = vector.load %arg5[%c0_21, %c0_22] : memref<1x64xf32, #tpu.memory_space<vmem>>, vector<1x64xf32>
      %39 = vector.broadcast %38 : vector<1x64xf32> to vector<16x64xf32>
      %40 = arith.addf %37, %39 : vector<16x64xf32>
      %c0_23 = arith.constant 0 : index
      %c0_24 = arith.constant 0 : index
      %41 = vector.load %arg8[%c0_23, %c0_24] : memref<16x64xf32, #tpu.memory_space<vmem>>, vector<16x64xf32>
      tpu.vector_store %arg8[%c0_23, %c0_24], %40 {strides = array<i32>} : memref<16x64xf32, #tpu.memory_space<vmem>>, vector<16x64xf32>,
    } else {
    }
    return
  }
  func.func @transform_0(%arg0: i32, %arg1: i32, %arg2: i32) -> (i32, i32) {
    %c0_i32 = arith.constant 0 : i32
    return %arg0, %arg2 : i32, i32
  }
  func.func @transform_1(%arg0: i32, %arg1: i32, %arg2: i32) -> (i32, i32) {
    %c0_i32 = arith.constant 0 : i32
    return %arg2, %arg1 : i32, i32
  }
  func.func @transform_2(%arg0: i32, %arg1: i32, %arg2: i32) -> (i32, i32) {
    %c0_i32 = arith.constant 0 : i32
    %c0_i32_0 = arith.constant 0 : i32
    return %c0_i32, %arg1 : i32, i32
  }
  func.func @transform_3(%arg0: i32, %arg1: i32, %arg2: i32) -> (i32, i32) {
    %c0_i32 = arith.constant 0 : i32
    %c0_i32_0 = arith.constant 0 : i32
    return %c0_i32, %arg2 : i32, i32
  }
  func.func @transform_4(%arg0: i32, %arg1: i32, %arg2: i32) -> (i32, i32) {
    %c0_i32 = arith.constant 0 : i32
    %c0_i32_0 = arith.constant 0 : i32
    return %c0_i32, %arg2 : i32, i32
  }
  func.func @transform_5(%arg0: i32, %arg1: i32, %arg2: i32) -> (i32, i32) {
    %c0_i32 = arith.constant 0 : i32
    return %arg0, %arg1 : i32, i32
  }
}

</mosaic_0001>

<bundles_post_ra>
// kernel: transformer_forward.43
= control target key start
LH: loop header
LB: loop body
LE: loop exit
PB: predicated region body
PF: predicated region fallthrough
CT: control target
= control target key end

     0   :  { %vm22_vm0 = vcmask 261120   ;;  %v144_v0 = vmov 0.0   ;;  %vm145_vm1 = vmmov 0   ;;  %s202_s1 = inlined_call_operand.vmem [shape: bf16[32,32], index: 1, kind: input, shape index: {}]   ;;  %s203_s0 = inlined_call_operand.vmem [shape: bf16[16,32], index: 0, kind: input, shape index: {}]   ;;  %s204_s2 = inlined_call_operand.vmem [shape: f32[1,32], index: 2, kind: input, shape index: {}]   ;;  %s205_s3 = inlined_call_operand.vmem [shape: f32[16,32], index: 3, kind: input, shape index: {}]   ;;  %s206_s4 = inlined_call_operand.vmem [shape: f32[16,32], index: 4, kind: output, shape index: {}]  }
   0x1   :  { %131 = vmatprep.subr.bf16.mxu0 %v144_v0  ;;  %v141_v1 = vld [vmem:[%s202_s1] sm:$0xff]   ;;  %135 = vmatprep.mubr.msk.bf16.mxu0 %vm145_vm1, %v144_v0  ;;  %23 = vst.msk [vmem:[#allocation2] sm:$0xff] %vm22_vm0, %v144_v0  ;;  %24 = vst.msk [vmem:[#allocation2 + $0x8] sm:$0xff] %vm22_vm0, %v144_v0  ;;  %v142_v2 = vld [vmem:[%s202_s1 + $0x8] sm:$0xff]  }
   0x2   :  { %132 = vmatpush3.bf16.msra.mxu0 %v141_v1  ;;  %v143_v3 = vld [vmem:[%s203_s0] sm:$0xff]   ;;  %v114_v17 = vld [vmem:[%s205_s3 + $0x8] sm:$0xff] }
   0x3   :  { %133 = vmatprep.subr.bf16.mxu0 %v144_v0  ;;  %v127_v12 = vld [vmem:[%s204_s2] ss:$0 sm:$0xff] }
   0x4   :  { %v113_v14 = vld [vmem:[%s205_s3] sm:$0xff] }
   0x6   :  { %134 = vmatpush3.bf16.msra.mxu0 %v142_v2 }
   0x8   :  { %v27_v4 = vld [vmem:[#allocation2] sm:$0xff]  ;;  %v28_v6 = vld [vmem:[#allocation2 + $0x8] sm:$0xff] }
   0x9   :  { %136 = vmatmul.mubr.msk.bf16.vlgmr.msra.gmra.mrb[0].mxu0 %vm22_vm0, %v143_v3 }
  0xdc   :  { %v88_v5 = vpop.f32.mrb[0].mxu0 }
  0xdd   :  { %v95_v7 = vadd.f32 %v88_v5, %v27_v4  ;;  %v137_v8 = vpop.f32.mrb[1].mxu0 }
  0xde   :  { %v91_v9 = vpop.f32.mrb[2].mxu0 }
  0xdf   :  { %97 = vst.msk [vmem:[#allocation2] sm:$0xff] %vm22_vm0, %v95_v7  ;;  %v96_v10 = vadd.f32 %v91_v9, %v28_v6  ;;  %v138_v11 = vpop.f32.mrb[3].mxu0 }
  0xe1   :  { %98 = vst.msk [vmem:[#allocation2 + $0x8] sm:$0xff] %vm22_vm0, %v96_v10 }
  0xe6   :  { %v102_v13 = vld [vmem:[#allocation2] sm:$0xff] }
  0xe7   :  { %v111_v15 = vadd.f32 %v127_v12, %v102_v13 }
  0xe8   :  { %v103_v16 = vld [vmem:[#allocation2 + $0x8] sm:$0xff] }
  0xe9   :  { %v115_v18 = vadd.f32 %v113_v14, %v111_v15  ;;  %v112_v19 = vadd.f32 %v127_v12, %v103_v16 }
  0xeb   :  { %117 = vst.msk [vmem:[%s206_s4] sm:$0xff] %vm22_vm0, %v115_v18  ;;  %v116_v20 = vadd.f32 %v114_v17, %v112_v19 }
  0xed   :  { %118 = vst.msk [vmem:[%s206_s4 + $0x8] sm:$0xff] %vm22_vm0, %v116_v20 }

// kernel: transformer_forward.41
= control target key start
LH: loop header
LB: loop body
LE: loop exit
PB: predicated region body
PF: predicated region fallthrough
CT: control target
= control target key end

     0   :  { %vm30_vm0 = vcmask 261120   ;;  %v202_v15 = vmov 0.0   ;;  %vm203_vm1 = vmmov 0   ;;  %vm25_vm2 = vcmask 785408   ;;  %s270_s0 = inlined_call_operand.vmem [shape: f32[16,32], index: 0, kind: input, shape index: {}]   ;;  %s271_s1 = inlined_call_operand.vmem [shape: bf16[32,96], index: 1, kind: input, shape index: {}]   ;;  %s272_s3 = inlined_call_operand.vmem [shape: f32[1,32], index: 3, kind: input, shape index: {}]   ;;  %s273_s4 = inlined_call_operand.vmem [shape: f32[1,32], index: 4, kind: input, shape index: {}]   ;;  %s274_s2 = inlined_call_operand.vmem [shape: f32[1,96], index: 2, kind: input, shape index: {}]   ;;  %s275_s5 = inlined_call_operand.vmem [shape: bf16[16,96], index: 5, kind: output, shape index: {}]  }
   0x1   :  { %v28_v0 = vld [vmem:[%s270_s0] sm:$0xff]  ;;  %v29_v1 = vld [vmem:[%s270_s0 + $0x8] sm:$0xff]  ;;  %186 = vmatprep.subr.bf16.mxu0 %v202_v15  ;;  %190 = vmatprep.mubr.msk.bf16.mxu0 %vm203_vm1, %v202_v15  ;;  %26 = vst.msk [vmem:[#allocation2] sm:$0xff] %vm25_vm2, %v202_v15  ;;  %27 = vst.msk [vmem:[#allocation2 + $0x8] sm:$0xff] %vm25_vm2, %v202_v15  ;;  %vm166_vm3 = vcmask 781312  }
   0x2   :  { %v31_v2 = vsel %vm30_vm0, %v28_v0, 0.0  ;;  %v34_v3 = vsel %vm30_vm0, %v29_v1, 0.0  ;;  %v196_v14 = vld [vmem:[%s271_s1] sm:$0xff]   ;;  %v197_v16 = vld [vmem:[%s271_s1 + $0x8] sm:$0xff]  }
   0x3   :  { %32 = vadd.xlane.f32.xlu0 %v31_v2  ;;  %187 = vmatpush3.bf16.msra.mxu0 %v196_v14  ;;  %v173_v25 = vld [vmem:[%s272_s3] ss:$0 sm:$0xff] }
   0x4   :  { %188 = vmatprep.subr.bf16.mxu0 %v202_v15  ;;  %v174_v29 = vld [vmem:[%s273_s4] ss:$0 sm:$0xff] }
   0x5   :  { %v178_v42 = vld [vmem:[%s274_s2] ss:$0 sm:$0xff] }
   0x7   :  { %35 = vadd.xlane.f32.xlu0 %v34_v3  ;;  %189 = vmatpush3.bf16.msra.mxu0 %v197_v16 }
   0x8   :  { %v76_v34 = vld [vmem:[#allocation2] sm:$0xff]  ;;  %v77_v36 = vld [vmem:[#allocation2 + $0x8] sm:$0xff] }
  0x90   :  { %v33_v4 = vpop.xlane.xlu0 %32 }
  0x91   :  { %v38_v5 = vmul.f32 0.03125, %v33_v4 }
  0x93   :  { %v40_v6 = vsub.f32 %v28_v0, %v38_v5 }
  0x94   :  { %v36_v7 = vpop.xlane.xlu0 %35 }
  0x95   :  { %v39_v8 = vmul.f32 0.03125, %v36_v7  ;;  %v42_v9 = vmul.f32 %v40_v6, %v40_v6 }
  0x97   :  { %v41_v10 = vsub.f32 %v29_v1, %v39_v8  ;;  %v44_v11 = vsel %vm30_vm0, %v42_v9, 0.0 }
  0x98   :  { %45 = vadd.xlane.f32.xlu1 %v44_v11 }
  0x99   :  { %v43_v12 = vmul.f32 %v41_v10, %v41_v10 }
  0x9b   :  { %v47_v13 = vsel %vm30_vm0, %v43_v12, 0.0 }
  0x9c   :  { %48 = vadd.xlane.f32.xlu1 %v47_v13 }
 0x125   :  { %v46_v17 = vpop.xlane.xlu1 %45 }
 0x126   :  { %v50_v18 = vmul.f32 0.03125, %v46_v17 }
 0x128   :  { %v52_v19 = vadd.f32 1e-05, %v50_v18 }
 0x129   :  { %v49_v20 = vpop.xlane.xlu1 %48 }
 0x12a   :  { %198 = vrsqrt.f32 %v52_v19  ;;  %v51_v21 = vmul.f32 0.03125, %v49_v20 }
 0x12c   :  { %v53_v22 = vadd.f32 1e-05, %v51_v21 }
 0x12e   :  { %200 = vrsqrt.f32 %v53_v22 }
 0x134   :  { %v199_v23 = vpop.eup %198 }
 0x135   :  { %v56_v24 = vmul.f32 %v199_v23, %v40_v6 }
 0x137   :  { %v65_v28 = vmul.f32 %v173_v25, %v56_v24 }
 0x138   :  { %v201_v26 = vpop.eup %200 }
 0x139   :  { %v57_v27 = vmul.f32 %v201_v26, %v41_v10  ;;  %v74_v31 = vadd.f32 %v174_v29, %v65_v28 }
 0x13b   :  { %v66_v30 = vmul.f32 %v173_v25, %v57_v27 }
 0x13d   :  { %v75_v32 = vadd.f32 %v174_v29, %v66_v30 }
 0x13f   :  { %v78_v33 = vpack.c.bf16 %v75_v32, %v74_v31 }
 0x141   :  { %191 = vmatmul.mubr.msk.bf16.vlgmr.msra.gmra.mrb[0].mxu0 %vm30_vm0, %v78_v33 }
 0x214   :  { %v132_v35 = vpop.f32.mrb[0].mxu0 }
 0x215   :  { %v139_v37 = vadd.f32 %v132_v35, %v76_v34  ;;  %v192_v38 = vpop.f32.mrb[1].mxu0 }
 0x216   :  { %v135_v39 = vpop.f32.mrb[2].mxu0 }
 0x217   :  { %142 = vst.msk [vmem:[#allocation2] sm:$0xff] %vm25_vm2, %v139_v37  ;;  %v140_v40 = vadd.f32 %v135_v39, %v77_v36  ;;  %v193_v41 = vpop.f32.mrb[3].mxu0 }
 0x219   :  { %143 = vst.msk [vmem:[#allocation2 + $0x8] sm:$0xff] %vm25_vm2, %v140_v40 }
 0x21e   :  { %v147_v43 = vld [vmem:[#allocation2] sm:$0xff] }
 0x21f   :  { %v156_v44 = vadd.f32 %v178_v42, %v147_v43 }
 0x220   :  { %v148_v45 = vld [vmem:[#allocation2 + $0x8] sm:$0xff] }
 0x221   :  { %v181_v46 = vpack.c.bf16 %v156_v44, %v156_v44  ;;  %v157_v47 = vadd.f32 %v178_v42, %v148_v45 }
 0x223   :  { %167 = vst.msk [vmem:[%s275_s5] sm:$0xf] %vm166_vm3, %v181_v46  ;;  %v182_v48 = vpack.c.bf16 %v157_v47, %v157_v47 }
 0x225   :  { %168 = vst.msk [vmem:[%s275_s5 + $0x4] sm:$0xf] %vm166_vm3, %v182_v48 }

// kernel: transformer_forward.44
= control target key start
LH: loop header
LB: loop body
LE: loop exit
PB: predicated region body
PF: predicated region fallthrough
CT: control target
= control target key end

     0   :  { %vm25_vm0 = vcmask 261120   ;;  %v201_v15 = vmov 0.0   ;;  %vm202_vm1 = vmmov 0   ;;  %vm165_vm2 = vcmask 257024   ;;  %s269_s0 = inlined_call_operand.vmem [shape: f32[16,32], index: 0, kind: input, shape index: {}]   ;;  %s270_s1 = inlined_call_operand.vmem [shape: bf16[32,32], index: 1, kind: input, shape index: {}]   ;;  %s271_s3 = inlined_call_operand.vmem [shape: f32[1,32], index: 3, kind: input, shape index: {}]   ;;  %s272_s4 = inlined_call_operand.vmem [shape: f32[1,32], index: 4, kind: input, shape index: {}]   ;;  %s273_s2 = inlined_call_operand.vmem [shape: f32[1,32], index: 2, kind: input, shape index: {}]   ;;  %s274_s5 = inlined_call_operand.vmem [shape: bf16[16,32], index: 5, kind: output, shape index: {}]  }
   0x1   :  { %v28_v0 = vld [vmem:[%s269_s0] sm:$0xff]  ;;  %v29_v1 = vld [vmem:[%s269_s0 + $0x8] sm:$0xff]  ;;  %185 = vmatprep.subr.bf16.mxu0 %v201_v15  ;;  %26 = vst.msk [vmem:[#allocation2] sm:$0xff] %vm25_vm0, %v201_v15  ;;  %27 = vst.msk [vmem:[#allocation2 + $0x8] sm:$0xff] %vm25_vm0, %v201_v15  ;;  %189 = vmatprep.mubr.msk.bf16.mxu0 %vm202_vm1, %v201_v15 }
   0x2   :  { %v31_v2 = vsel %vm25_vm0, %v28_v0, 0.0  ;;  %v34_v3 = vsel %vm25_vm0, %v29_v1, 0.0  ;;  %v195_v14 = vld [vmem:[%s270_s1] sm:$0xff]   ;;  %v196_v16 = vld [vmem:[%s270_s1 + $0x8] sm:$0xff]  }
   0x3   :  { %32 = vadd.xlane.f32.xlu0 %v31_v2  ;;  %186 = vmatpush3.bf16.msra.mxu0 %v195_v14  ;;  %v172_v25 = vld [vmem:[%s271_s3] ss:$0 sm:$0xff] }
   0x4   :  { %187 = vmatprep.subr.bf16.mxu0 %v201_v15  ;;  %v173_v29 = vld [vmem:[%s272_s4] ss:$0 sm:$0xff] }
   0x5   :  { %v177_v42 = vld [vmem:[%s273_s2] ss:$0 sm:$0xff] }
   0x7   :  { %35 = vadd.xlane.f32.xlu0 %v34_v3  ;;  %188 = vmatpush3.bf16.msra.mxu0 %v196_v16 }
   0x8   :  { %v76_v34 = vld [vmem:[#allocation2] sm:$0xff]  ;;  %v77_v36 = vld [vmem:[#allocation2 + $0x8] sm:$0xff] }
  0x90   :  { %v33_v4 = vpop.xlane.xlu0 %32 }
  0x91   :  { %v38_v5 = vmul.f32 0.03125, %v33_v4 }
  0x93   :  { %v40_v6 = vsub.f32 %v28_v0, %v38_v5 }
  0x94   :  { %v36_v7 = vpop.xlane.xlu0 %35 }
  0x95   :  { %v39_v8 = vmul.f32 0.03125, %v36_v7  ;;  %v42_v9 = vmul.f32 %v40_v6, %v40_v6 }
  0x97   :  { %v41_v10 = vsub.f32 %v29_v1, %v39_v8  ;;  %v44_v11 = vsel %vm25_vm0, %v42_v9, 0.0 }
  0x98   :  { %45 = vadd.xlane.f32.xlu1 %v44_v11 }
  0x99   :  { %v43_v12 = vmul.f32 %v41_v10, %v41_v10 }
  0x9b   :  { %v47_v13 = vsel %vm25_vm0, %v43_v12, 0.0 }
  0x9c   :  { %48 = vadd.xlane.f32.xlu1 %v47_v13 }
 0x125   :  { %v46_v17 = vpop.xlane.xlu1 %45 }
 0x126   :  { %v50_v18 = vmul.f32 0.03125, %v46_v17 }
 0x128   :  { %v52_v19 = vadd.f32 1e-05, %v50_v18 }
 0x129   :  { %v49_v20 = vpop.xlane.xlu1 %48 }
 0x12a   :  { %197 = vrsqrt.f32 %v52_v19  ;;  %v51_v21 = vmul.f32 0.03125, %v49_v20 }
 0x12c   :  { %v53_v22 = vadd.f32 1e-05, %v51_v21 }
 0x12e   :  { %199 = vrsqrt.f32 %v53_v22 }
 0x134   :  { %v198_v23 = vpop.eup %197 }
 0x135   :  { %v56_v24 = vmul.f32 %v198_v23, %v40_v6 }
 0x137   :  { %v65_v28 = vmul.f32 %v172_v25, %v56_v24 }
 0x138   :  { %v200_v26 = vpop.eup %199 }
 0x139   :  { %v57_v27 = vmul.f32 %v200_v26, %v41_v10  ;;  %v74_v31 = vadd.f32 %v173_v29, %v65_v28 }
 0x13b   :  { %v66_v30 = vmul.f32 %v172_v25, %v57_v27 }
 0x13d   :  { %v75_v32 = vadd.f32 %v173_v29, %v66_v30 }
 0x13f   :  { %v78_v33 = vpack.c.bf16 %v75_v32, %v74_v31 }
 0x141   :  { %190 = vmatmul.mubr.msk.bf16.vlgmr.msra.gmra.mrb[0].mxu0 %vm25_vm0, %v78_v33 }
 0x214   :  { %v132_v35 = vpop.f32.mrb[0].mxu0 }
 0x215   :  { %v139_v37 = vadd.f32 %v132_v35, %v76_v34  ;;  %v191_v38 = vpop.f32.mrb[1].mxu0 }
 0x216   :  { %v135_v39 = vpop.f32.mrb[2].mxu0 }
 0x217   :  { %141 = vst.msk [vmem:[#allocation2] sm:$0xff] %vm25_vm0, %v139_v37  ;;  %v140_v40 = vadd.f32 %v135_v39, %v77_v36  ;;  %v192_v41 = vpop.f32.mrb[3].mxu0 }
 0x219   :  { %142 = vst.msk [vmem:[#allocation2 + $0x8] sm:$0xff] %vm25_vm0, %v140_v40 }
 0x21e   :  { %v146_v43 = vld [vmem:[#allocation2] sm:$0xff] }
 0x21f   :  { %v155_v44 = vadd.f32 %v177_v42, %v146_v43 }
 0x220   :  { %v147_v45 = vld [vmem:[#allocation2 + $0x8] sm:$0xff] }
 0x221   :  { %v180_v46 = vpack.c.bf16 %v155_v44, %v155_v44  ;;  %v156_v47 = vadd.f32 %v177_v42, %v147_v45 }
 0x223   :  { %166 = vst.msk [vmem:[%s274_s5] sm:$0xf] %vm165_vm2, %v180_v46  ;;  %v181_v48 = vpack.c.bf16 %v156_v47, %v156_v47 }
 0x225   :  { %167 = vst.msk [vmem:[%s274_s5 + $0x4] sm:$0xf] %vm165_vm2, %v181_v48 }

// kernel: transformer_forward.42
= control target key start
LH: loop header
LB: loop body
LE: loop exit
PB: predicated region body
PF: predicated region fallthrough
CT: control target
= control target key end

     0   :  { %s864_s15 = smov 0   ;;  %s866_s16 = smov 0   ;;  %s941_s0 = inlined_call_operand.vmem [shape: bf16[2,4,8,8], index: 0, kind: input, shape index: {}]   ;;  %s942_s1 = inlined_call_operand.vmem [shape: bf16[2,4,8,8], index: 1, kind: input, shape index: {}]   ;;  %s943_s2 = inlined_call_operand.vmem [shape: bf16[2,4,8,8], index: 2, kind: input, shape index: {}]   ;;  %s944_s3 = inlined_call_operand.vmem [shape: f32[2,1,8], index: 3, kind: input, shape index: {}]   ;;  %s945_s4 = inlined_call_operand.vmem [shape: bf16[2,4,8,8], index: 4, kind: output, shape index: {}]  }
   0x1   :  { %s868_s17 = smov 0   ;;  %s870_s18 = smov 0  }
   0x2   :  { %s872_s19 = smov 0  }
   0x3 LB: > { %s36_s20 = sadd.s32 1, %s825_s17  ;;  %s40_s21 = sadd.s32 1, %s829_s18  ;;  %s833_s19 = sphi %s872_s19, %s14_s19   ;;  %s829_s18 = sphi %s870_s18, %s949_s18   ;;  %s825_s17 = sphi %s868_s17, %s948_s17   ;;  %s821_s16 = sphi %s866_s16, %s947_s16   ;;  %s817_s15 = sphi %s864_s15, %s946_s15  }
   0x4   : > { %p38_p0 = scmp.ge.s32.totalorder %s36_s20, 4  ;;  %p714_p1 = scmp.ge.s32.totalorder %s833_s19, 1 }
   0x5   : > { %p255_p2 = scmp.lt.s32.totalorder %s833_s19, 9 }
   0x6   : > { %s951_s20 = smov (%p38_p0, %s36_s20), 0  ;;  %s953_s21 = smov (!%p38_p0, %s40_s21), %s829_s18 }
   0x7   : > { %p256_p3 = pnand %p714_p1, %p255_p2  ;;  %p42_p4 = scmp.ge.s32.totalorder %s953_s21, 2 }
   0x8   : > { %p321_p5 = scmp.lt.s32.totalorder (!%p256_p3), %s821_s16, 1  ;;  %p323_p6 = scmp.lt.s32.totalorder (!%p256_p3), %s817_s15, 3  ;;  %vm379_vm0 = vcmask (!%p256_p3), 64512   ;;  %v835_v0 = vmov (!%p256_p3), 0.0   ;;  %vm836_vm1 = vmmov (!%p256_p3), 0   ;;  %vm376_vm2 = vcmask (!%p256_p3), 7168  }
   0x9   : > { %s955_s21 = smov (%p42_p4, %s953_s21), 0  ;;  %259 = sbr.rel (%p256_p3) target bundleno = 832 (0x340), region = 36 }
   0xa   : > { %731 = vmatprep.subr.bf16.mxu0 (!%p256_p3), %v835_v0  ;;  %380 = vst.msk [vmem:[#allocation4] sm:$0xff] (!%p256_p3), %vm379_vm0, %v835_v0  ;;  %733 = vmatprep.mubr.msk.bf16.mxu0 (!%p256_p3), %vm836_vm1, %v835_v0  ;;  %v837_v4 = vmov (!%p256_p3), -inf   ;;  %v435_v5 = vlaneseq (!%p256_p3)  ;;  %v838_v21 = vmov (!%p256_p3), 0   ;;  %vm489_vm4 = vcmask (!%p256_p3), 1043456  }
   0xb   : > { %737 = vmatprep.subr.bf16.mxu1 (!%p256_p3), %v835_v0  ;;  %739 = vmatprep.mubr.msk.bf16.mxu1 (!%p256_p3), %vm836_vm1, %v835_v0  ;;  %377 = vst.msk [vmem:[#allocation2] sm:$0xff] (!%p256_p3), %vm376_vm2, %v837_v4  ;;  %378 = vst.msk [vmem:[#allocation3] sm:$0xff] (!%p256_p3), %vm376_vm2, %v835_v0  ;;  %vm549_vm5 = vcmask (!%p256_p3), 60416  }
   0xc   : > { %v436_v8 = vshrl.u32 (!%p256_p3), %v435_v5, 7  ;;  %v448_v11 = vand.u32 (!%p256_p3), 127, %v435_v5  ;;  %787 = vset.pattern.permute.xlu0 (!%p256_p3), %v838_v21  ;;  %788 = vset.pattern.permute.xlu1 (!%p256_p3), %v838_v21 }
   0xe   : > { %v437_v10 = vsub.s32 (!%p256_p3), 0, %v436_v8  ;;  %vm451_vm3 = vcmp.ge.s32.totalorder (!%p256_p3), %v436_v8, %v448_v11 }
  0x10   : > { %s957_s16 = smov (!%p321_p5, %s821_s16), 1  ;;  %s959_s15 = smov (!%p323_p6, %s817_s15), 3 }
  0x11   : > { %s715_s22 = sshll.u32 %s957_s16, 2  ;;  %s359_s7 = scalar_lea.vmem %s944_s3, %s957_s16  ;;  %v477_v41 = vld [vmem:[#allocation4] sm:$0xff] }
  0x12   : > { %s329_s23 = sadd.s32 %s715_s22, %s959_s15  ;;  %v431_v6 = vld [vmem:[%s359_s7] sm:$0x1]  ;;  %v469_v36 = vld [vmem:[#allocation3] sm:$0xff] }
  0x13   : > { %s895_s24 = sshll.u32 %s329_s23, 2  ;;  %v432_v7 = vsub.f32 1.0, %v431_v6  ;;  %v453_v22 = vld [vmem:[#allocation2] sm:$0xff] }
  0x14   : > { %s342_s27 = scalar_lea.vmem %s942_s1, %s895_s24  ;;  %s331_s30 = scalar_lea.vmem %s941_s0, %s895_s24 }
  0x15   : > { %v382_v1 = vld [vmem:[%s342_s27] sm:$0xf]  ;;  %v433_v9 = vmul.f32 -1e+09, %v432_v7  ;;  %s353_s10 = scalar_lea.vmem %s943_s2, %s895_s24  ;;  %s370_s13 = scalar_lea.vmem %s945_s4, %s895_s24 }
  0x16   : > { %v388_v2 = vsel %vm379_vm0, %v382_v1, 0  ;;  %v381_v3 = vld [vmem:[%s331_s30] sm:$0xf] }
  0x17   : > { %732 = vmatpush3.bf16.xpose.msra.mxu0 %v388_v2  ;;  %v438_v12 = vrot.slane %v433_v9, %v437_v10  ;;  %v485_v26 = vld [vmem:[%s353_s10] sm:$0xf] }
  0x18   : > { %v491_v27 = vsel %vm489_vm4, %v485_v26, 0 }
  0x19   : > { %738 = vmatpush3.bf16.msra.mxu1 %v491_v27 }
  0x1e   : > { %734 = vmatmul.mubr.msk.bf16.vlgmr.msra.gmra.mrb[0].mxu0 %vm379_vm0, %v381_v3 }
  0xf1   : > { %v424_v13 = vpop.f32.mrb[0].mxu0 }
  0xf2   : > { %v430_v14 = vmul.f32 0.35355338, %v424_v13  ;;  %v735_v15 = vpop.f32.mrb[1].mxu0 }
  0xf3   : > { %v427_v16 = vpop.f32.mrb[2].mxu0 }
  0xf4   : > { %v440_v17 = vadd.f32 %v438_v12, %v430_v14  ;;  %v736_v18 = vpop.f32.mrb[3].mxu0 }
  0xf6   : > { %v452_v19 = vsel %vm451_vm3, %v440_v17, -1e+09 }
  0xf7   : > { %v454_v20 = vsel %vm379_vm0, %v452_v19, -inf }
  0xf8   : > { %455 = vmax.xlane.f32.xlu0 %v454_v20 }
 0x185   : > { %v456_v23 = vpop.xlane.xlu0 %455 }
 0x186   : > { %v457_v24 = vmax.f32 %v453_v22, %v456_v23 }
 0x188   : > { %v458_v25 = vsub.f32 %v453_v22, %v457_v24  ;;  %535 = vst.msk [vmem:[#allocation2] sm:$0xff] %vm376_vm2, %v457_v24  ;;  %463 = vperm.xlu0 %787, %v457_v24  }
 0x18a   : > { %v459_v34 = vmul.f32 1.442695, %v458_v25 }
 0x207   : > { %v464_v28 = vpop.permute.xlu0 %463 }
 0x208   : > { %v466_v29 = vsub.f32 %v452_v19, %v464_v28 }
 0x20a   : > { %v467_v30 = vmul.f32 1.442695, %v466_v29 }
 0x20c   : > { %789 = vpow2.f32 %v467_v30 }
 0x20d   : > { %791 = vpow2.f32 %v459_v34 }
 0x216   : > { %v790_v31 = vpop.eup %789 }
 0x217   : > { %v471_v32 = vsel %vm379_vm0, %v790_v31, 0.0  ;;  %v484_v33 = vpack.c.bf16 %v790_v31, %v790_v31  ;;  %v792_v35 = vpop.eup %791 }
 0x218   : > { %472 = vadd.xlane.f32.xlu1 %v471_v32  ;;  %v470_v37 = vmul.f32 %v792_v35, %v469_v36 }
 0x219   : > { %740 = vmatmul.mubr.msk.bf16.vlgmr.msra.gmra.mrb[0].mxu1 %vm379_vm0, %v484_v33 }
 0x229   : > { %480 = vperm.xlu1 %788, %v792_v35  }
 0x2a5   : > { %v473_v38 = vpop.xlane.xlu1 %472 }
 0x2a6   : > { %v474_v39 = vadd.f32 %v473_v38, %v470_v37 }
 0x2a8   : > { %476 = vst.msk [vmem:[#allocation3] sm:$0xff] %vm376_vm2, %v474_v39 }
 0x2a9   : > { %v481_v42 = vpop.permute.xlu1 %480 }
 0x2aa   : > { %v483_v43 = vmul.f32 %v481_v42, %v477_v41 }
 0x2af   : > { %v540_v40 = vld [vmem:[#allocation3] sm:$0xff] }
 0x2b0   : > { %543 = vperm.xlu1 %788, %v540_v40  }
 0x2ec   : > { %v527_v44 = vpop.f32.mrb[0].mxu1 }
 0x2ed   : > { %v533_v45 = vadd.f32 %v527_v44, %v483_v43  ;;  %v741_v46 = vpop.f32.mrb[1].mxu1 }
 0x2ee   : > { %v530_v47 = vpop.f32.mrb[2].mxu1 }
 0x2ef   : > { %534 = vst.msk [vmem:[#allocation4] sm:$0xff] %vm379_vm0, %v533_v45  ;;  %v742_v48 = vpop.f32.mrb[3].mxu1 }
 0x2f6   : > { %v539_v51 = vld [vmem:[#allocation4] sm:$0xff] }
 0x32f   : > { %v544_v49 = vpop.permute.xlu1 %543 }
 0x330   : > { %793 = vrcp.f32 %v544_v49 }
 0x33a   : > { %v794_v50 = vpop.eup %793 }
 0x33b   : > { %v547_v52 = vmul.f32 %v794_v50, %v539_v51 }
 0x33d   : > { %v548_v53 = vpack.c.bf16 %v547_v52, %v547_v52 }
 0x33f   : > { %550 = vst.msk [vmem:[%s370_s13] sm:$0xf] %vm549_vm5, %v548_v53 }
 0x340 PF: > { %s14_s19 = sadd.s32 1, %s833_s19   ;;  %s946_s15 = smov %s825_s17 }
 0x341   : > { %p11_p7 = scmp.ge.s32.totalorder %s14_s19, 10   ;;  %s947_s16 = smov %s829_s18 }
 0x342   : > { %s948_s17 = smov %s951_s20  ;;  %s949_s18 = smov %s955_s21 }
 0x343   :  { %13 = sbr.rel (!%p11_p7) target bundleno = 3 (0x3), region = 83 }

// kernel: transformer_forward.40
= control target key start
LH: loop header
LB: loop body
LE: loop exit
PB: predicated region body
PF: predicated region fallthrough
CT: control target
= control target key end

     0   :  { %vm16_vm0 = vcmask 261120   ;;  %s118_s0 = inlined_call_operand.vmem [shape: f32[16,32], index: 0, kind: input, shape index: {}]   ;;  %s119_s1 = inlined_call_operand.vmem [shape: f32[1,32], index: 1, kind: input, shape index: {}]   ;;  %s120_s2 = inlined_call_operand.vmem [shape: f32[1,32], index: 2, kind: input, shape index: {}]   ;;  %s121_s3 = inlined_call_operand.vmem [shape: f32[16,32], index: 3, kind: output, shape index: {}]  }
   0x1   :  { %v14_v0 = vld [vmem:[%s118_s0] sm:$0xff]  ;;  %v15_v1 = vld [vmem:[%s118_s0 + $0x8] sm:$0xff] }
   0x2   :  { %v17_v2 = vsel %vm16_vm0, %v14_v0, 0.0  ;;  %v20_v3 = vsel %vm16_vm0, %v15_v1, 0.0  ;;  %v68_v21 = vld [vmem:[%s119_s1] ss:$0 sm:$0xff] }
   0x3   :  { %18 = vadd.xlane.f32.xlu0 %v17_v2  ;;  %v69_v23 = vld [vmem:[%s120_s2] ss:$0 sm:$0xff] }
   0x7   :  { %21 = vadd.xlane.f32.xlu0 %v20_v3 }
  0x90   :  { %v19_v4 = vpop.xlane.xlu0 %18 }
  0x91   :  { %v24_v5 = vmul.f32 0.03125, %v19_v4 }
  0x93   :  { %v26_v6 = vsub.f32 %v14_v0, %v24_v5 }
  0x94   :  { %v22_v7 = vpop.xlane.xlu0 %21 }
  0x95   :  { %v25_v8 = vmul.f32 0.03125, %v22_v7  ;;  %v28_v9 = vmul.f32 %v26_v6, %v26_v6 }
  0x97   :  { %v27_v10 = vsub.f32 %v15_v1, %v25_v8  ;;  %v30_v11 = vsel %vm16_vm0, %v28_v9, 0.0 }
  0x98   :  { %31 = vadd.xlane.f32.xlu1 %v30_v11 }
  0x99   :  { %v29_v12 = vmul.f32 %v27_v10, %v27_v10 }
  0x9b   :  { %v33_v13 = vsel %vm16_vm0, %v29_v12, 0.0 }
  0x9c   :  { %34 = vadd.xlane.f32.xlu1 %v33_v13 }
 0x125   :  { %v32_v14 = vpop.xlane.xlu1 %31 }
 0x126   :  { %v36_v15 = vmul.f32 0.03125, %v32_v14 }
 0x128   :  { %v38_v16 = vadd.f32 1e-05, %v36_v15 }
 0x129   :  { %v35_v17 = vpop.xlane.xlu1 %34 }
 0x12a   :  { %70 = vrsqrt.f32 %v38_v16  ;;  %v37_v18 = vmul.f32 0.03125, %v35_v17 }
 0x12c   :  { %v39_v19 = vadd.f32 1e-05, %v37_v18 }
 0x12e   :  { %72 = vrsqrt.f32 %v39_v19 }
 0x134   :  { %v71_v20 = vpop.eup %70 }
 0x135   :  { %v42_v22 = vmul.f32 %v71_v20, %v26_v6 }
 0x137   :  { %v51_v24 = vmul.f32 %v68_v21, %v42_v22 }
 0x138   :  { %v73_v25 = vpop.eup %72 }
 0x139   :  { %v60_v26 = vadd.f32 %v69_v23, %v51_v24  ;;  %v43_v27 = vmul.f32 %v73_v25, %v27_v10 }
 0x13b   :  { %62 = vst.msk [vmem:[%s121_s3] sm:$0xff] %vm16_vm0, %v60_v26  ;;  %v52_v28 = vmul.f32 %v68_v21, %v43_v27 }
 0x13d   :  { %v61_v29 = vadd.f32 %v69_v23, %v52_v28 }
 0x13f   :  { %63 = vst.msk [vmem:[%s121_s3 + $0x8] sm:$0xff] %vm16_vm0, %v61_v29 }

// kernel: transformer_forward.33
= control target key start
LH: loop header
LB: loop body
LE: loop exit
PB: predicated region body
PF: predicated region fallthrough
CT: control target
= control target key end

     0   :  { %vm30_vm0 = vcmask 261120   ;;  %v191_v15 = vmov 0.0   ;;  %vm192_vm1 = vmmov 0   ;;  %vm25_vm2 = vcmask 523264   ;;  %s261_s0 = inlined_call_operand.vmem [shape: f32[16,32], index: 0, kind: input, shape index: {}]   ;;  %s262_s1 = inlined_call_operand.vmem [shape: bf16[32,64], index: 1, kind: input, shape index: {}]   ;;  %s263_s3 = inlined_call_operand.vmem [shape: f32[1,32], index: 3, kind: input, shape index: {}]   ;;  %s264_s4 = inlined_call_operand.vmem [shape: f32[1,32], index: 4, kind: input, shape index: {}]   ;;  %s265_s2 = inlined_call_operand.vmem [shape: f32[1,64], index: 2, kind: input, shape index: {}]   ;;  %s266_s5 = inlined_call_operand.vmem [shape: f32[16,64], index: 5, kind: output, shape index: {}]  }
   0x1   :  { %v28_v0 = vld [vmem:[%s261_s0] sm:$0xff]  ;;  %v29_v1 = vld [vmem:[%s261_s0 + $0x8] sm:$0xff]  ;;  %175 = vmatprep.subr.bf16.mxu0 %v191_v15  ;;  %179 = vmatprep.mubr.msk.bf16.mxu0 %vm192_vm1, %v191_v15  ;;  %26 = vst.msk [vmem:[#allocation2] sm:$0xff] %vm25_vm2, %v191_v15  ;;  %27 = vst.msk [vmem:[#allocation2 + $0x8] sm:$0xff] %vm25_vm2, %v191_v15 }
   0x2   :  { %v31_v2 = vsel %vm30_vm0, %v28_v0, 0.0  ;;  %v34_v3 = vsel %vm30_vm0, %v29_v1, 0.0  ;;  %v185_v14 = vld [vmem:[%s262_s1] sm:$0xff]   ;;  %v186_v16 = vld [vmem:[%s262_s1 + $0x8] sm:$0xff]  }
   0x3   :  { %32 = vadd.xlane.f32.xlu0 %v31_v2  ;;  %176 = vmatpush3.bf16.msra.mxu0 %v185_v14  ;;  %v166_v25 = vld [vmem:[%s263_s3] ss:$0 sm:$0xff] }
   0x4   :  { %177 = vmatprep.subr.bf16.mxu0 %v191_v15  ;;  %v167_v29 = vld [vmem:[%s264_s4] ss:$0 sm:$0xff] }
   0x5   :  { %v171_v42 = vld [vmem:[%s265_s2] ss:$0 sm:$0xff] }
   0x7   :  { %35 = vadd.xlane.f32.xlu0 %v34_v3  ;;  %178 = vmatpush3.bf16.msra.mxu0 %v186_v16 }
   0x8   :  { %v76_v34 = vld [vmem:[#allocation2] sm:$0xff]  ;;  %v77_v36 = vld [vmem:[#allocation2 + $0x8] sm:$0xff] }
  0x90   :  { %v33_v4 = vpop.xlane.xlu0 %32 }
  0x91   :  { %v38_v5 = vmul.f32 0.03125, %v33_v4 }
  0x93   :  { %v40_v6 = vsub.f32 %v28_v0, %v38_v5 }
  0x94   :  { %v36_v7 = vpop.xlane.xlu0 %35 }
  0x95   :  { %v39_v8 = vmul.f32 0.03125, %v36_v7  ;;  %v42_v9 = vmul.f32 %v40_v6, %v40_v6 }
  0x97   :  { %v41_v10 = vsub.f32 %v29_v1, %v39_v8  ;;  %v44_v11 = vsel %vm30_vm0, %v42_v9, 0.0 }
  0x98   :  { %45 = vadd.xlane.f32.xlu1 %v44_v11 }
  0x99   :  { %v43_v12 = vmul.f32 %v41_v10, %v41_v10 }
  0x9b   :  { %v47_v13 = vsel %vm30_vm0, %v43_v12, 0.0 }
  0x9c   :  { %48 = vadd.xlane.f32.xlu1 %v47_v13 }
 0x125   :  { %v46_v17 = vpop.xlane.xlu1 %45 }
 0x126   :  { %v50_v18 = vmul.f32 0.03125, %v46_v17 }
 0x128   :  { %v52_v19 = vadd.f32 1e-05, %v50_v18 }
 0x129   :  { %v49_v20 = vpop.xlane.xlu1 %48 }
 0x12a   :  { %187 = vrsqrt.f32 %v52_v19  ;;  %v51_v21 = vmul.f32 0.03125, %v49_v20 }
 0x12c   :  { %v53_v22 = vadd.f32 1e-05, %v51_v21 }
 0x12e   :  { %189 = vrsqrt.f32 %v53_v22 }
 0x134   :  { %v188_v23 = vpop.eup %187 }
 0x135   :  { %v56_v24 = vmul.f32 %v188_v23, %v40_v6 }
 0x137   :  { %v65_v28 = vmul.f32 %v166_v25, %v56_v24 }
 0x138   :  { %v190_v26 = vpop.eup %189 }
 0x139   :  { %v57_v27 = vmul.f32 %v190_v26, %v41_v10  ;;  %v74_v31 = vadd.f32 %v167_v29, %v65_v28 }
 0x13b   :  { %v66_v30 = vmul.f32 %v166_v25, %v57_v27 }
 0x13d   :  { %v75_v32 = vadd.f32 %v167_v29, %v66_v30 }
 0x13f   :  { %v78_v33 = vpack.c.bf16 %v75_v32, %v74_v31 }
 0x141   :  { %180 = vmatmul.mubr.msk.bf16.vlgmr.msra.gmra.mrb[0].mxu0 %vm30_vm0, %v78_v33 }
 0x214   :  { %v132_v35 = vpop.f32.mrb[0].mxu0 }
 0x215   :  { %v139_v37 = vadd.f32 %v132_v35, %v76_v34  ;;  %v181_v38 = vpop.f32.mrb[1].mxu0 }
 0x216   :  { %v135_v39 = vpop.f32.mrb[2].mxu0 }
 0x217   :  { %142 = vst.msk [vmem:[#allocation2] sm:$0xff] %vm25_vm2, %v139_v37  ;;  %v140_v40 = vadd.f32 %v135_v39, %v77_v36  ;;  %v182_v41 = vpop.f32.mrb[3].mxu0 }
 0x219   :  { %143 = vst.msk [vmem:[#allocation2 + $0x8] sm:$0xff] %vm25_vm2, %v140_v40 }
 0x21e   :  { %v147_v43 = vld [vmem:[#allocation2] sm:$0xff] }
 0x21f   :  { %v156_v44 = vadd.f32 %v171_v42, %v147_v43 }
 0x220   :  { %v148_v45 = vld [vmem:[#allocation2 + $0x8] sm:$0xff] }
 0x221   :  { %v158_v46 = vmax.f32 %v156_v44, 0.0  ;;  %v157_v47 = vadd.f32 %v171_v42, %v148_v45 }
 0x223   :  { %160 = vst.msk [vmem:[%s266_s5] sm:$0xff] %vm25_vm2, %v158_v46  ;;  %v159_v48 = vmax.f32 %v157_v47, 0.0 }
 0x225   :  { %161 = vst.msk [vmem:[%s266_s5 + $0x8] sm:$0xff] %vm25_vm2, %v159_v48 }

// kernel: transformer_forward.34
= control target key start
LH: loop header
LB: loop body
LE: loop exit
PB: predicated region body
PF: predicated region fallthrough
CT: control target
= control target key end

     0   :  { %vm22_vm0 = vcmask 261120   ;;  %v165_v0 = vmov 0.0   ;;  %vm166_vm1 = vmmov 0   ;;  %vm62_vm2 = vcmask 523264   ;;  %s231_s1 = inlined_call_operand.vmem [shape: bf16[64,32], index: 1, kind: input, shape index: {}]   ;;  %s232_s0 = inlined_call_operand.vmem [shape: f32[16,64], index: 0, kind: input, shape index: {}]   ;;  %s233_s2 = inlined_call_operand.vmem [shape: f32[1,32], index: 2, kind: input, shape index: {}]   ;;  %s234_s3 = inlined_call_operand.vmem [shape: f32[16,32], index: 3, kind: input, shape index: {}]   ;;  %s235_s4 = inlined_call_operand.vmem [shape: f32[16,32], index: 4, kind: output, shape index: {}]  }
   0x1   :  { %147 = vmatprep.subr.bf16.mxu0 %v165_v0  ;;  %v161_v1 = vld [vmem:[%s231_s1] sm:$0xff]   ;;  %155 = vmatprep.mubr.msk.bf16.mxu0 %vm166_vm1, %v165_v0  ;;  %23 = vst.msk [vmem:[#allocation2] sm:$0xff] %vm22_vm0, %v165_v0  ;;  %24 = vst.msk [vmem:[#allocation2 + $0x8] sm:$0xff] %vm22_vm0, %v165_v0  ;;  %v162_v2 = vld [vmem:[%s231_s1 + $0x8] sm:$0xff]  }
   0x2   :  { %148 = vmatpush3.bf16.msra.mxu0 %v161_v1  ;;  %v163_v3 = vld [vmem:[%s231_s1 + $0x10] sm:$0xff]   ;;  %v164_v4 = vld [vmem:[%s231_s1 + $0x18] sm:$0xff]   ;;  %v25_v5 = vld [vmem:[%s232_s0] sm:$0xff] }
   0x3   :  { %149 = vmatprep.subr.bf16.mxu0 %v165_v0  ;;  %v26_v6 = vld [vmem:[%s232_s0 + $0x8] sm:$0xff]  ;;  %v141_v16 = vld [vmem:[%s233_s2] ss:$0 sm:$0xff] }
   0x4   :  { %v29_v7 = vpack.c.bf16 %v26_v6, %v25_v5  ;;  %v126_v18 = vld [vmem:[%s234_s3] sm:$0xff]  ;;  %v127_v20 = vld [vmem:[%s234_s3 + $0x8] sm:$0xff] }
   0x6   :  { %150 = vmatpush3.bf16.msra.mxu0 %v162_v2 }
   0x7   :  { %151 = vmatprep.subr.bf16.mxu0 %v165_v0 }
   0x8   :  { %v27_v8 = vld [vmem:[#allocation2] sm:$0xff]  ;;  %v28_v10 = vld [vmem:[#allocation2 + $0x8] sm:$0xff] }
   0xa   :  { %152 = vmatpush3.bf16.msra.mxu0 %v163_v3 }
   0xb   :  { %153 = vmatprep.subr.bf16.mxu0 %v165_v0 }
   0xe   :  { %154 = vmatpush3.bf16.msra.mxu0 %v164_v4 }
  0x11   :  { %156 = vmatmul.mubr.msk.bf16.vlgmr.msra.gmra.mrb[0].mxu0 %vm62_vm2, %v29_v7 }
  0xe4   :  { %v100_v9 = vpop.f32.mrb[0].mxu0 }
  0xe5   :  { %v107_v11 = vadd.f32 %v100_v9, %v27_v8  ;;  %v157_v12 = vpop.f32.mrb[1].mxu0 }
  0xe6   :  { %v103_v13 = vpop.f32.mrb[2].mxu0 }
  0xe7   :  { %110 = vst.msk [vmem:[#allocation2] sm:$0xff] %vm22_vm0, %v107_v11  ;;  %v108_v14 = vadd.f32 %v103_v13, %v28_v10  ;;  %v158_v15 = vpop.f32.mrb[3].mxu0 }
  0xe9   :  { %111 = vst.msk [vmem:[#allocation2 + $0x8] sm:$0xff] %vm22_vm0, %v108_v14 }
  0xee   :  { %v115_v17 = vld [vmem:[#allocation2] sm:$0xff] }
  0xef   :  { %v124_v19 = vadd.f32 %v141_v16, %v115_v17 }
  0xf0   :  { %v116_v21 = vld [vmem:[#allocation2 + $0x8] sm:$0xff] }
  0xf1   :  { %v128_v22 = vadd.f32 %v126_v18, %v124_v19  ;;  %v125_v23 = vadd.f32 %v141_v16, %v116_v21 }
  0xf3   :  { %130 = vst.msk [vmem:[%s235_s4] sm:$0xff] %vm22_vm0, %v128_v22  ;;  %v129_v24 = vadd.f32 %v127_v20, %v125_v23 }
  0xf5   :  { %131 = vst.msk [vmem:[%s235_s4 + $0x8] sm:$0xff] %vm22_vm0, %v129_v24 }

// kernel: transformer_forward.31
= control target key start
LH: loop header
LB: loop body
LE: loop exit
PB: predicated region body
PF: predicated region fallthrough
CT: control target
= control target key end

     0   :  { %s852_s15 = smov 0   ;;  %s854_s16 = smov 0   ;;  %s929_s0 = inlined_call_operand.vmem [shape: bf16[2,4,8,8], index: 0, kind: input, shape index: {}]   ;;  %s930_s1 = inlined_call_operand.vmem [shape: bf16[2,4,8,8], index: 1, kind: input, shape index: {}]   ;;  %s931_s2 = inlined_call_operand.vmem [shape: bf16[2,4,8,8], index: 2, kind: input, shape index: {}]   ;;  %s932_s3 = inlined_call_operand.vmem [shape: f32[2,1,8], index: 3, kind: input, shape index: {}]   ;;  %s933_s4 = inlined_call_operand.vmem [shape: bf16[2,4,8,8], index: 4, kind: output, shape index: {}]  }
   0x1   :  { %s856_s17 = smov 0   ;;  %s858_s18 = smov 0  }
   0x2   :  { %s860_s19 = smov 0  }
   0x3 LB: > { %s36_s20 = sadd.s32 1, %s813_s17  ;;  %s40_s21 = sadd.s32 1, %s817_s18  ;;  %s821_s19 = sphi %s860_s19, %s14_s19   ;;  %s817_s18 = sphi %s858_s18, %s937_s18   ;;  %s813_s17 = sphi %s856_s17, %s936_s17   ;;  %s809_s16 = sphi %s854_s16, %s935_s16   ;;  %s805_s15 = sphi %s852_s15, %s934_s15  }
   0x4   : > { %p38_p0 = scmp.ge.s32.totalorder %s36_s20, 4  ;;  %p702_p1 = scmp.ge.s32.totalorder %s821_s19, 1 }
   0x5   : > { %p255_p2 = scmp.lt.s32.totalorder %s821_s19, 9 }
   0x6   : > { %s939_s20 = smov (%p38_p0, %s36_s20), 0  ;;  %s941_s21 = smov (!%p38_p0, %s40_s21), %s817_s18 }
   0x7   : > { %p256_p3 = pnand %p702_p1, %p255_p2  ;;  %p42_p4 = scmp.ge.s32.totalorder %s941_s21, 2 }
   0x8   : > { %p321_p5 = scmp.lt.s32.totalorder (!%p256_p3), %s809_s16, 1  ;;  %p323_p6 = scmp.lt.s32.totalorder (!%p256_p3), %s805_s15, 3  ;;  %vm379_vm0 = vcmask (!%p256_p3), 64512   ;;  %v823_v0 = vmov (!%p256_p3), 0.0   ;;  %vm824_vm1 = vmmov (!%p256_p3), 0   ;;  %vm376_vm2 = vcmask (!%p256_p3), 7168  }
   0x9   : > { %s943_s21 = smov (%p42_p4, %s941_s21), 0  ;;  %259 = sbr.rel (%p256_p3) target bundleno = 831 (0x33f), region = 36 }
   0xa   : > { %719 = vmatprep.subr.bf16.mxu0 (!%p256_p3), %v823_v0  ;;  %380 = vst.msk [vmem:[#allocation4] sm:$0xff] (!%p256_p3), %vm379_vm0, %v823_v0  ;;  %721 = vmatprep.mubr.msk.bf16.mxu0 (!%p256_p3), %vm824_vm1, %v823_v0  ;;  %v825_v4 = vmov (!%p256_p3), -inf   ;;  %v435_v5 = vlaneseq (!%p256_p3)  ;;  %v826_v19 = vmov (!%p256_p3), 0   ;;  %vm477_vm3 = vcmask (!%p256_p3), 1043456  }
   0xb   : > { %725 = vmatprep.subr.bf16.mxu1 (!%p256_p3), %v823_v0  ;;  %727 = vmatprep.mubr.msk.bf16.mxu1 (!%p256_p3), %vm824_vm1, %v823_v0  ;;  %377 = vst.msk [vmem:[#allocation2] sm:$0xff] (!%p256_p3), %vm376_vm2, %v825_v4  ;;  %378 = vst.msk [vmem:[#allocation3] sm:$0xff] (!%p256_p3), %vm376_vm2, %v823_v0  ;;  %vm537_vm4 = vcmask (!%p256_p3), 60416  }
   0xc   : > { %v436_v8 = vshrl.u32 (!%p256_p3), %v435_v5, 7  ;;  %775 = vset.pattern.permute.xlu0 (!%p256_p3), %v826_v19  ;;  %776 = vset.pattern.permute.xlu1 (!%p256_p3), %v826_v19 }
   0xe   : > { %v437_v10 = vsub.s32 (!%p256_p3), 0, %v436_v8 }
  0x10   : > { %s945_s16 = smov (!%p321_p5, %s809_s16), 1  ;;  %s947_s15 = smov (!%p323_p6, %s805_s15), 3 }
  0x11   : > { %s703_s22 = sshll.u32 %s945_s16, 2  ;;  %s359_s7 = scalar_lea.vmem %s932_s3, %s945_s16  ;;  %v465_v39 = vld [vmem:[#allocation4] sm:$0xff] }
  0x12   : > { %s329_s23 = sadd.s32 %s703_s22, %s947_s15  ;;  %v431_v6 = vld [vmem:[%s359_s7] sm:$0x1]  ;;  %v457_v34 = vld [vmem:[#allocation3] sm:$0xff] }
  0x13   : > { %s883_s24 = sshll.u32 %s329_s23, 2  ;;  %v432_v7 = vsub.f32 1.0, %v431_v6  ;;  %v441_v20 = vld [vmem:[#allocation2] sm:$0xff] }
  0x14   : > { %s342_s27 = scalar_lea.vmem %s930_s1, %s883_s24  ;;  %s331_s30 = scalar_lea.vmem %s929_s0, %s883_s24 }
  0x15   : > { %v382_v1 = vld [vmem:[%s342_s27] sm:$0xf]  ;;  %v433_v9 = vmul.f32 -1e+09, %v432_v7  ;;  %s353_s10 = scalar_lea.vmem %s931_s2, %s883_s24  ;;  %s370_s13 = scalar_lea.vmem %s933_s4, %s883_s24 }
  0x16   : > { %v388_v2 = vsel %vm379_vm0, %v382_v1, 0  ;;  %v381_v3 = vld [vmem:[%s331_s30] sm:$0xf] }
  0x17   : > { %720 = vmatpush3.bf16.xpose.msra.mxu0 %v388_v2  ;;  %v438_v11 = vrot.slane %v433_v9, %v437_v10  ;;  %v473_v24 = vld [vmem:[%s353_s10] sm:$0xf] }
  0x18   : > { %v479_v25 = vsel %vm477_vm3, %v473_v24, 0 }
  0x19   : > { %726 = vmatpush3.bf16.msra.mxu1 %v479_v25 }
  0x1e   : > { %722 = vmatmul.mubr.msk.bf16.vlgmr.msra.gmra.mrb[0].mxu0 %vm379_vm0, %v381_v3 }
  0xf1   : > { %v424_v12 = vpop.f32.mrb[0].mxu0 }
  0xf2   : > { %v430_v13 = vmul.f32 0.35355338, %v424_v12  ;;  %v723_v14 = vpop.f32.mrb[1].mxu0 }
  0xf3   : > { %v427_v15 = vpop.f32.mrb[2].mxu0 }
  0xf4   : > { %v724_v16 = vpop.f32.mrb[3].mxu0  ;;  %v440_v17 = vadd.f32 %v438_v11, %v430_v13 }
  0xf6   : > { %v442_v18 = vsel %vm379_vm0, %v440_v17, -inf }
  0xf7   : > { %443 = vmax.xlane.f32.xlu0 %v442_v18 }
 0x184   : > { %v444_v21 = vpop.xlane.xlu0 %443 }
 0x185   : > { %v445_v22 = vmax.f32 %v441_v20, %v444_v21 }
 0x187   : > { %v446_v23 = vsub.f32 %v441_v20, %v445_v22  ;;  %523 = vst.msk [vmem:[#allocation2] sm:$0xff] %vm376_vm2, %v445_v22  ;;  %451 = vperm.xlu0 %775, %v445_v22  }
 0x189   : > { %v447_v32 = vmul.f32 1.442695, %v446_v23 }
 0x206   : > { %v452_v26 = vpop.permute.xlu0 %451 }
 0x207   : > { %v454_v27 = vsub.f32 %v440_v17, %v452_v26 }
 0x209   : > { %v455_v28 = vmul.f32 1.442695, %v454_v27 }
 0x20b   : > { %777 = vpow2.f32 %v455_v28 }
 0x20c   : > { %779 = vpow2.f32 %v447_v32 }
 0x215   : > { %v778_v29 = vpop.eup %777 }
 0x216   : > { %v459_v30 = vsel %vm379_vm0, %v778_v29, 0.0  ;;  %v472_v31 = vpack.c.bf16 %v778_v29, %v778_v29  ;;  %v780_v33 = vpop.eup %779 }
 0x217   : > { %460 = vadd.xlane.f32.xlu1 %v459_v30  ;;  %v458_v35 = vmul.f32 %v780_v33, %v457_v34 }
 0x218   : > { %728 = vmatmul.mubr.msk.bf16.vlgmr.msra.gmra.mrb[0].mxu1 %vm379_vm0, %v472_v31 }
 0x228   : > { %468 = vperm.xlu1 %776, %v780_v33  }
 0x2a4   : > { %v461_v36 = vpop.xlane.xlu1 %460 }
 0x2a5   : > { %v462_v37 = vadd.f32 %v461_v36, %v458_v35 }
 0x2a7   : > { %464 = vst.msk [vmem:[#allocation3] sm:$0xff] %vm376_vm2, %v462_v37 }
 0x2a8   : > { %v469_v40 = vpop.permute.xlu1 %468 }
 0x2a9   : > { %v471_v41 = vmul.f32 %v469_v40, %v465_v39 }
 0x2ae   : > { %v528_v38 = vld [vmem:[#allocation3] sm:$0xff] }
 0x2af   : > { %531 = vperm.xlu1 %776, %v528_v38  }
 0x2eb   : > { %v515_v42 = vpop.f32.mrb[0].mxu1 }
 0x2ec   : > { %v521_v43 = vadd.f32 %v515_v42, %v471_v41  ;;  %v729_v44 = vpop.f32.mrb[1].mxu1 }
 0x2ed   : > { %v518_v45 = vpop.f32.mrb[2].mxu1 }
 0x2ee   : > { %522 = vst.msk [vmem:[#allocation4] sm:$0xff] %vm379_vm0, %v521_v43  ;;  %v730_v46 = vpop.f32.mrb[3].mxu1 }
 0x2f5   : > { %v527_v49 = vld [vmem:[#allocation4] sm:$0xff] }
 0x32e   : > { %v532_v47 = vpop.permute.xlu1 %531 }
 0x32f   : > { %781 = vrcp.f32 %v532_v47 }
 0x339   : > { %v782_v48 = vpop.eup %781 }
 0x33a   : > { %v535_v50 = vmul.f32 %v782_v48, %v527_v49 }
 0x33c   : > { %v536_v51 = vpack.c.bf16 %v535_v50, %v535_v50 }
 0x33e   : > { %538 = vst.msk [vmem:[%s370_s13] sm:$0xf] %vm537_vm4, %v536_v51 }
 0x33f PF: > { %s14_s19 = sadd.s32 1, %s821_s19   ;;  %s934_s15 = smov %s813_s17 }
 0x340   : > { %p11_p7 = scmp.ge.s32.totalorder %s14_s19, 10   ;;  %s935_s16 = smov %s817_s18 }
 0x341   : > { %s936_s17 = smov %s939_s20  ;;  %s937_s18 = smov %s943_s21 }
 0x342   :  { %13 = sbr.rel (!%p11_p7) target bundleno = 3 (0x3), region = 83 }

// kernel: transformer_forward.45
= control target key start
LH: loop header
LB: loop body
LE: loop exit
PB: predicated region body
PF: predicated region fallthrough
CT: control target
= control target key end

     0   :  { %vm19_vm0 = vcmask 523264   ;;  %v145_v0 = vmov 0.0   ;;  %vm146_vm1 = vmmov 0   ;;  %vm43_vm2 = vcmask 261120   ;;  %s192_s1 = inlined_call_operand.vmem [shape: bf16[32,64], index: 1, kind: input, shape index: {}]   ;;  %s193_s0 = inlined_call_operand.vmem [shape: f32[16,32], index: 0, kind: input, shape index: {}]   ;;  %s194_s2 = inlined_call_operand.vmem [shape: f32[1,64], index: 2, kind: input, shape index: {}]   ;;  %s195_s3 = inlined_call_operand.vmem [shape: bf16[16,64], index: 3, kind: output, shape index: {}]  }
   0x1   :  { %133 = vmatprep.subr.bf16.mxu0 %v145_v0  ;;  %v143_v1 = vld [vmem:[%s192_s1] sm:$0xff]   ;;  %137 = vmatprep.mubr.msk.bf16.mxu0 %vm146_vm1, %v145_v0  ;;  %20 = vst.msk [vmem:[#allocation2] sm:$0xff] %vm19_vm0, %v145_v0  ;;  %21 = vst.msk [vmem:[#allocation2 + $0x8] sm:$0xff] %vm19_vm0, %v145_v0  ;;  %v144_v2 = vld [vmem:[%s192_s1 + $0x8] sm:$0xff]   ;;  %vm115_vm3 = vcmask 519168  }
   0x2   :  { %134 = vmatpush3.bf16.msra.mxu0 %v143_v1  ;;  %v22_v3 = vld [vmem:[%s193_s0] sm:$0xff]  ;;  %v23_v4 = vld [vmem:[%s193_s0 + $0x8] sm:$0xff] }
   0x3   :  { %135 = vmatprep.subr.bf16.mxu0 %v145_v0  ;;  %v26_v5 = vpack.c.bf16 %v23_v4, %v22_v3  ;;  %v125_v14 = vld [vmem:[%s194_s2] ss:$0 sm:$0xff] }
   0x6   :  { %136 = vmatpush3.bf16.msra.mxu0 %v144_v2 }
   0x8   :  { %v24_v6 = vld [vmem:[#allocation2] sm:$0xff]  ;;  %v25_v8 = vld [vmem:[#allocation2 + $0x8] sm:$0xff] }
   0x9   :  { %138 = vmatmul.mubr.msk.bf16.vlgmr.msra.gmra.mrb[0].mxu0 %vm43_vm2, %v26_v5 }
  0xdc   :  { %v81_v7 = vpop.f32.mrb[0].mxu0 }
  0xdd   :  { %v88_v9 = vadd.f32 %v81_v7, %v24_v6  ;;  %v139_v10 = vpop.f32.mrb[1].mxu0 }
  0xde   :  { %v84_v11 = vpop.f32.mrb[2].mxu0 }
  0xdf   :  { %91 = vst.msk [vmem:[#allocation2] sm:$0xff] %vm19_vm0, %v88_v9  ;;  %v89_v12 = vadd.f32 %v84_v11, %v25_v8  ;;  %v140_v13 = vpop.f32.mrb[3].mxu0 }
  0xe1   :  { %92 = vst.msk [vmem:[#allocation2 + $0x8] sm:$0xff] %vm19_vm0, %v89_v12 }
  0xe6   :  { %v96_v15 = vld [vmem:[#allocation2] sm:$0xff] }
  0xe7   :  { %v105_v16 = vadd.f32 %v125_v14, %v96_v15 }
  0xe8   :  { %v97_v17 = vld [vmem:[#allocation2 + $0x8] sm:$0xff] }
  0xe9   :  { %v128_v18 = vpack.c.bf16 %v105_v16, %v105_v16  ;;  %v106_v19 = vadd.f32 %v125_v14, %v97_v17 }
  0xeb   :  { %116 = vst.msk [vmem:[%s195_s3] sm:$0xf] %vm115_vm3, %v128_v18  ;;  %v129_v20 = vpack.c.bf16 %v106_v19, %v106_v19 }
  0xed   :  { %117 = vst.msk [vmem:[%s195_s3 + $0x4] sm:$0xf] %vm115_vm3, %v129_v20 }

// kernel: transformer_forward.59
= control target key start
LH: loop header
LB: loop body
LE: loop exit
PB: predicated region body
PF: predicated region fallthrough
CT: control target
= control target key end

     0   :  { %vm31_vm0 = vcmask 261120   ;;  %s308_s0 = inlined_call_operand.vmem [shape: f32[16,32], index: 0, kind: input, shape index: {}]   ;;  %s309_s1 = inlined_call_operand.vmem [shape: bf16[32,64], index: 1, kind: input, shape index: {}]   ;;  %s310_s2 = inlined_call_operand.vmem [shape: f32[1,64], index: 2, kind: input, shape index: {}]   ;;  %s311_s3 = inlined_call_operand.vmem [shape: f32[1,32], index: 3, kind: input, shape index: {}]   ;;  %s312_s4 = inlined_call_operand.vmem [shape: f32[1,32], index: 4, kind: input, shape index: {}]   ;;  %s313_s5 = inlined_call_operand.hbm [shape: f32[16,64], index: 5, kind: output, shape index: {}]  }
   0x1   :  { %v29_v0 = vld [vmem:[%s308_s0] sm:$0xff]  ;;  %v30_v1 = vld [vmem:[%s308_s0 + $0x8] sm:$0xff] }
   0x2   :  { %v32_v2 = vsel %vm31_vm0, %v29_v0, 0.0 }
   0x3   :  { %33 = vadd.xlane.f32.xlu0 %v32_v2 }
   0x4   :  { %10 = vsyncpa [#allocation4], 0  ;;  %v35_v3 = vsel %vm31_vm0, %v30_v1, 0.0  ;;  %v199_v14 = vld [vmem:[%s309_s1] sm:$0xff]   ;;  %v229_v15 = vmov 0.0   ;;  %v200_v16 = vld [vmem:[%s309_s1 + $0x8] sm:$0xff]  }
   0x5   :  { %186 = vmatprep.subr.bf16.mxu0 %v229_v15  ;;  %vm230_vm1 = vmmov 0   ;;  %vm26_vm2 = vcmask 523264   ;;  %v177_v25 = vld [vmem:[%s311_s3] ss:$0 sm:$0xff]  ;;  %s231_s28 = smov [#allocation3]  }
   0x6   :  { %187 = vmatpush3.bf16.msra.mxu0 %v199_v14  ;;  %190 = vmatprep.mubr.msk.bf16.mxu0 %vm230_vm1, %v229_v15  ;;  %27 = vst.msk [vmem:[#allocation2] sm:$0xff] %vm26_vm2, %v229_v15  ;;  %28 = vst.msk [vmem:[#allocation2 + $0x8] sm:$0xff] %vm26_vm2, %v229_v15  ;;  %v178_v29 = vld [vmem:[%s312_s4] ss:$0 sm:$0xff]  ;;  %s166_s29 = sshll.u32 %s231_s28, 4  ;;  %s167_s29 = int_to_ptr.vmem [resolvable:$true] %s166_s29 }
   0x7   :  { %36 = vadd.xlane.f32.xlu0 %v35_v3  ;;  %188 = vmatprep.subr.bf16.mxu0 %v229_v15  ;;  %v182_v42 = vld [vmem:[%s310_s2] ss:$0 sm:$0xff]  ;;  %s205_s30 = scalar_lea.vmem %s167_s29, 256  ;;  %p210_p1 = scmp.lt.s32.totalorder %s167_s29, %s167_s29 }
   0x8   :  { %p206_p0 = scmp.ne.s32.totalorder %s167_s29, %s205_s30  ;;  %p211_p2 = scmp.lt.s32.totalorder %s205_s30, %s205_s30 }
   0xa   :  { %189 = vmatpush3.bf16.msra.mxu0 %v200_v16  ;;  %p212_p3 = por %p211_p2, %p210_p1 }
   0xc   :  { %p213_p4 = pnand %p212_p3, %p206_p0 }
   0xd   :  { %v77_v34 = vld [vmem:[#allocation2] sm:$0xff]  ;;  %v78_v36 = vld [vmem:[#allocation2 + $0x8] sm:$0xff] }
  0x90   :  { %v34_v4 = vpop.xlane.xlu0 %33 }
  0x91   :  { %v39_v5 = vmul.f32 0.03125, %v34_v4 }
  0x93   :  { %v41_v6 = vsub.f32 %v29_v0, %v39_v5 }
  0x94   :  { %v37_v7 = vpop.xlane.xlu0 %36 }
  0x95   :  { %v40_v8 = vmul.f32 0.03125, %v37_v7  ;;  %v43_v9 = vmul.f32 %v41_v6, %v41_v6 }
  0x97   :  { %v42_v10 = vsub.f32 %v30_v1, %v40_v8  ;;  %v45_v11 = vsel %vm31_vm0, %v43_v9, 0.0 }
  0x98   :  { %46 = vadd.xlane.f32.xlu1 %v45_v11 }
  0x99   :  { %v44_v12 = vmul.f32 %v42_v10, %v42_v10 }
  0x9b   :  { %v48_v13 = vsel %vm31_vm0, %v44_v12, 0.0 }
  0x9c   :  { %49 = vadd.xlane.f32.xlu1 %v48_v13 }
 0x125   :  { %v47_v17 = vpop.xlane.xlu1 %46 }
 0x126   :  { %v51_v18 = vmul.f32 0.03125, %v47_v17 }
 0x128   :  { %v53_v19 = vadd.f32 1e-05, %v51_v18 }
 0x129   :  { %v50_v20 = vpop.xlane.xlu1 %49 }
 0x12a   :  { %201 = vrsqrt.f32 %v53_v19  ;;  %v52_v21 = vmul.f32 0.03125, %v50_v20 }
 0x12c   :  { %v54_v22 = vadd.f32 1e-05, %v52_v21 }
 0x12e   :  { %203 = vrsqrt.f32 %v54_v22 }
 0x134   :  { %v202_v23 = vpop.eup %201 }
 0x135   :  { %v57_v24 = vmul.f32 %v202_v23, %v41_v6 }
 0x137   :  { %v66_v28 = vmul.f32 %v177_v25, %v57_v24 }
 0x138   :  { %v204_v26 = vpop.eup %203 }
 0x139   :  { %v58_v27 = vmul.f32 %v204_v26, %v42_v10  ;;  %v75_v31 = vadd.f32 %v178_v29, %v66_v28 }
 0x13b   :  { %v67_v30 = vmul.f32 %v177_v25, %v58_v27 }
 0x13d   :  { %v76_v32 = vadd.f32 %v178_v29, %v67_v30 }
 0x13f   :  { %v79_v33 = vpack.c.bf16 %v76_v32, %v75_v31 }
 0x141   :  { %191 = vmatmul.mubr.msk.bf16.vlgmr.msra.gmra.mrb[0].mxu0 %vm31_vm0, %v79_v33 }
 0x214   :  { %v133_v35 = vpop.f32.mrb[0].mxu0 }
 0x215   :  { %v140_v37 = vadd.f32 %v133_v35, %v77_v34  ;;  %v192_v38 = vpop.f32.mrb[1].mxu0 }
 0x216   :  { %v136_v39 = vpop.f32.mrb[2].mxu0 }
 0x217   :  { %143 = vst.msk [vmem:[#allocation2] sm:$0xff] %vm26_vm2, %v140_v37  ;;  %v141_v40 = vadd.f32 %v136_v39, %v78_v36  ;;  %v193_v41 = vpop.f32.mrb[3].mxu0 }
 0x219   :  { %144 = vst.msk [vmem:[#allocation2 + $0x8] sm:$0xff] %vm26_vm2, %v141_v40 }
 0x21e   :  { %v148_v43 = vld [vmem:[#allocation2] sm:$0xff] }
 0x21f   :  { %v157_v44 = vadd.f32 %v182_v42, %v148_v43 }
 0x220   :  { %v149_v45 = vld [vmem:[#allocation2 + $0x8] sm:$0xff] }
 0x221   :  { %v158_v46 = vadd.f32 %v182_v42, %v149_v45  ;;  %159 = vst.msk [vmem:[#allocation3] sm:$0xff] %vm26_vm2, %v157_v44 }
 0x223   :  { %160 = vst.msk [vmem:[#allocation3 + $0x8] sm:$0xff] %vm26_vm2, %v158_v46 }
 0x224   :  { %216 = shalt.err (!%p213_p4)
}
 0x225   :  { %s217_s7 = scalar_lea.hbm %s313_s5, 256 }
 0x226   :  { %p218_p5 = scmp.ne.s32.totalorder %s313_s5, %s217_s7  ;;  %p221_p6 = scmp.lt.u32.totalorder %s217_s7, %s313_s5 }
 0x228   :  { %p223_p7 = pnand %p221_p6, %p218_p5 }
 0x22a   :  { %226 = shalt.err (!%p223_p7)
}
 0x22b   :  { %s232_s12 = smov 128   ;;  %s233_s13 = smov 8  }
 0x22c   :  { %172 = dma.vmem_to_hbm [thread:$0]  %s167_s29, 256, %s313_s5, [#allocation4], %s232_s12, %s232_s12, %s233_s13  }
 0x22d   :  { %227 = dma.done.wait [#allocation4], 256  }
 0x22e   :  { %228 = vsyncadd [#allocation4], 4294967040 }
 0x22f   :  { %176 = vsyncpa [#allocation4], 1 }

</bundles_post_ra>
